<compile_context>
chip_gen: v6e
topology: v6e:2x2x1
jax: 0.10.0
libtpu: 0.0.40
codegen_flags: <defaults>
</compile_context>

<pallas_src>
import jax
import jax.numpy as jnp
from jax.experimental import pallas as pl
from jax.experimental.pallas import tpu as pltpu

HIDDEN_LAYERS = 20        # number of tanh(conv) blocks in the PyTorch module
LAYER_NEURONS = 32
NUM_OUTPUTS = 3
IN_DIM = 2                # "dimension = 2" in the PyTorch module


def _choose_tile(m):
    """Large lane tile (amortize ~0.35us/grid-step overhead), but keep >= 2 grid steps
    when the problem is big enough so both v7x TensorCores get work on the 'parallel'
    grid axis.  All candidates are multiples of 128 (lane width)."""
    for t in (2048, 1024, 512, 256, 128):
        if m >= 2 * t:
            return t
    return 128


def _mlpconv_kernel(x_ref, w0_ref, b0_ref, wh_ref, bh_ref, wl_ref, bl_ref, o_ref):
    """Fused 21-layer pointwise MLP on a (channels, lanes) tile.

    x_ref : (IN_DIM, L_TILE)                      input columns
    w0_ref: (LAYER_NEURONS, IN_DIM)               first conv weight (out, in)
    b0_ref: (LAYER_NEURONS, 1)                    first conv bias
    wh_ref: (H-1, LAYER_NEURONS, LAYER_NEURONS)   stacked hidden conv weights (out, in)
    bh_ref: (H-1, LAYER_NEURONS, 1)               stacked hidden conv biases
    wl_ref: (NUM_OUTPUTS, LAYER_NEURONS)          last conv weight (out, in)
    bl_ref: (NUM_OUTPUTS, 1)                      last conv bias
    o_ref : (NUM_OUTPUTS, L_TILE)                 output columns (lane-dense store)
    """
    x = x_ref[...]

    # layer 0: Conv1d(2 -> 32) + tanh
    h = jnp.tanh(
        jnp.dot(w0_ref[...], x, preferred_element_type=jnp.float32) + b0_ref[...]
    )

    # layers 1 .. HIDDEN_LAYERS-1: Conv1d(32 -> 32) + tanh.
    # Static Python loop -> static weight slices (zero-cost views), fully visible to
    # the LLO scheduler for MXU / VPU / EUP interleave.
    for l in range(HIDDEN_LAYERS - 1):
        w = wh_ref[l]            # (32, 32) static slice
        b = bh_ref[l]            # (32, 1)  broadcasts along lanes, no reshape
        h = jnp.tanh(jnp.dot(w, h, preferred_element_type=jnp.float32) + b)

    # last layer: Conv1d(32 -> 3), no activation
    out = jnp.dot(wl_ref[...], h, preferred_element_type=jnp.float32) + bl_ref[...]
    o_ref[...] = out.astype(o_ref.dtype)


@jax.jit
def mlpconv_forward(x_ncl, params):
    """x_ncl: (N, 2, L) float32  ->  (N, 3, L) float32 (matches PyTorch NCL Conv1d)."""
    w0, b0, wh, bh, wl, bl = params
    N, C, L = x_ncl.shape
    assert C == IN_DIM

    M = N * L
    l_tile = _choose_tile(M)
    M_pad = ((M + l_tile - 1) // l_tile) * l_tile

    # NCL -> (channels, columns): channels on sublanes, N*L on lanes.
    x_cm = jnp.transpose(x_ncl, (1, 0, 2)).reshape(C, M)
    x_cm = jnp.pad(x_cm, ((0, 0), (0, M_pad - M)))

    grid = (M_pad // l_tile,)

    out_cm = pl.pallas_call(
        _mlpconv_kernel,
        out_shape=jax.ShapeDtypeStruct((NUM_OUTPUTS, M_pad), jnp.float32),
        grid_spec=pltpu.PrefetchScalarGridSpec(
            num_scalar_prefetch=0,
            grid=grid,
            in_specs=[
                # streaming input tile
                pl.BlockSpec((IN_DIM, l_tile), lambda i: (0, i)),
                # parameters: same block every step -> stay resident in VMEM
                pl.BlockSpec((LAYER_NEURONS, IN_DIM), lambda i: (0, 0)),
                pl.BlockSpec((LAYER_NEURONS, 1), lambda i: (0, 0)),
                pl.BlockSpec(
                    (HIDDEN_LAYERS - 1, LAYER_NEURONS, LAYER_NEURONS),
                    lambda i: (0, 0, 0),
                ),
                pl.BlockSpec(
                    (HIDDEN_LAYERS - 1, LAYER_NEURONS, 1), lambda i: (0, 0, 0)
                ),
                pl.BlockSpec((NUM_OUTPUTS, LAYER_NEURONS), lambda i: (0, 0)),
                pl.BlockSpec((NUM_OUTPUTS, 1), lambda i: (0, 0)),
            ],
            out_specs=pl.BlockSpec((NUM_OUTPUTS, l_tile), lambda i: (0, i)),
        ),
        compiler_params=pltpu.CompilerParams(
            dimension_semantics=("parallel",)
        ),
    )(x_cm, w0, b0, wh, bh, wl, bl)

    out_cm = out_cm[:, :M]
    # (3, N*L) -> NCL (N, 3, L)
    return jnp.transpose(out_cm.reshape(NUM_OUTPUTS, N, L), (1, 0, 2))


def init_params(key):
    """Deterministic xavier-normal weights / unit-normal biases, matching the PyTorch
    Conv1d layers (kernel_size=1 dim squeezed; weights kept as (out_ch, in_ch))."""

    def xavier_normal(k, out_ch, in_ch):
        std = (2.0 / (in_ch + out_ch)) ** 0.5
        return std * jax.random.normal(k, (out_ch, in_ch), jnp.float32)

    keys = jax.random.split(key, 2 * (HIDDEN_LAYERS + 1))
    ki = iter(keys)

    w0 = xavier_normal(next(ki), LAYER_NEURONS, IN_DIM)
    b0 = jax.random.normal(next(ki), (LAYER_NEURONS, 1), jnp.float32)

    wh_list, bh_list = [], []
    for _ in range(HIDDEN_LAYERS - 1):
        wh_list.append(xavier_normal(next(ki), LAYER_NEURONS, LAYER_NEURONS))
        bh_list.append(jax.random.normal(next(ki), (LAYER_NEURONS, 1), jnp.float32))
    wh = jnp.stack(wh_list, axis=0)                      # (19, 32, 32)
    bh = jnp.stack(bh_list, axis=0)                      # (19, 32, 1)

    wl = xavier_normal(next(ki), NUM_OUTPUTS, LAYER_NEURONS)
    bl = jax.random.normal(next(ki), (NUM_OUTPUTS, 1), jnp.float32)

    return (w0, b0, wh, bh, wl, bl)


def _reference_forward(x_ncl, params):
    """Pure-JAX reference (same math, no Pallas) for a correctness check."""
    w0, b0, wh, bh, wl, bl = params
    N, C, L = x_ncl.shape
    h = jnp.transpose(x_ncl, (1, 0, 2)).reshape(C, N * L)
    h = jnp.tanh(w0 @ h + b0)
    for l in range(HIDDEN_LAYERS - 1):
        h = jnp.tanh(wh[l] @ h + bh[l])
    out = wl @ h + bl
    return jnp.transpose(out.reshape(NUM_OUTPUTS, N, L), (1, 0, 2))


if __name__ == "__main__":
    key = jax.random.PRNGKey(0)
    k_param, k_x = jax.random.split(key)

    params = init_params(k_param)

    # Small example consistent with nn.Conv1d NCL input: (batch=2, channels=2, length=16)
    x = jax.random.normal(k_x, (2, IN_DIM, 16), jnp.float32)

    out = mlpconv_forward(x, params)
    out = jax.block_until_ready(out)
    assert out.shape == (2, NUM_OUTPUTS, 16), out.shape

    ref = _reference_forward(x, params)
    assert jnp.allclose(out, ref, atol=1e-4, rtol=1e-4), "mismatch vs reference"

    print("KERNEL_OK")
</pallas_src>

<mosaic_0001>
module attributes {stable_mosaic.version = 11 : i64} {
  func.func @_mlpconv_kernel(%arg0: i32, %arg1: memref<2x128xf32, #tpu.memory_space<vmem>>, %arg2: memref<32x2xf32, #tpu.memory_space<vmem>>, %arg3: memref<32x1xf32, #tpu.memory_space<vmem>>, %arg4: memref<19x32x32xf32, #tpu.memory_space<vmem>>, %arg5: memref<19x32x1xf32, #tpu.memory_space<vmem>>, %arg6: memref<3x32xf32, #tpu.memory_space<vmem>>, %arg7: memref<3x1xf32, #tpu.memory_space<vmem>>, %arg8: memref<3x128xf32, #tpu.memory_space<vmem>>) attributes {dimension_semantics = [#tpu.dimension_semantics<parallel>], iteration_bounds = array<i64: 1>, scalar_prefetch = 0 : i64, scratch_operands = 0 : i64, tpu.core_type = #tpu.core_type<tc>, window_params = [{transform_indices = @transform_0, window_bounds = array<i64: 2, 128>}, {pipeline_mode = #tpu.pipeline_mode<synchronous>, transform_indices = @transform_1, window_bounds = array<i64: 32, 2>}, {pipeline_mode = #tpu.pipeline_mode<synchronous>, transform_indices = @transform_2, window_bounds = array<i64: 32, 1>}, {pipeline_mode = #tpu.pipeline_mode<synchronous>, transform_indices = @transform_3, window_bounds = array<i64: 19, 32, 32>}, {pipeline_mode = #tpu.pipeline_mode<synchronous>, transform_indices = @transform_4, window_bounds = array<i64: 19, 32, 1>}, {pipeline_mode = #tpu.pipeline_mode<synchronous>, transform_indices = @transform_5, window_bounds = array<i64: 3, 32>}, {pipeline_mode = #tpu.pipeline_mode<synchronous>, transform_indices = @transform_6, window_bounds = array<i64: 3, 1>}, {transform_indices = @transform_7, window_bounds = array<i64: 3, 128>}]} {
    %c0 = arith.constant 0 : index
    %c0_0 = arith.constant 0 : index
    %0 = vector.load %arg1[%c0, %c0_0] : memref<2x128xf32, #tpu.memory_space<vmem>>, vector<2x128xf32>
    %c0_1 = arith.constant 0 : index
    %c0_2 = arith.constant 0 : index
    %1 = vector.load %arg2[%c0_1, %c0_2] : memref<32x2xf32, #tpu.memory_space<vmem>>, vector<32x2xf32>
    %cst = arith.constant dense<0.000000e+00> : vector<32x128xf32>
    %2 = tpu.matmul %1, %0, %cst {dimension_numbers = #tpu.dot_dimension_numbers<[1], [0], [0], [1], [0, 0, 1, 1], [], []>} : vector<32x2xf32>, vector<2x128xf32>, vector<32x128xf32> -> vector<32x128xf32>
    %c0_3 = arith.constant 0 : index
    %c0_4 = arith.constant 0 : index
    %3 = vector.load %arg3[%c0_3, %c0_4] : memref<32x1xf32, #tpu.memory_space<vmem>>, vector<32x1xf32>
    %4 = vector.broadcast %3 : vector<32x1xf32> to vector<32x128xf32>
    %5 = arith.addf %2, %4 : vector<32x128xf32>
    %6 = math.tanh %5 : vector<32x128xf32>
    %c0_5 = arith.constant 0 : index
    %c0_6 = arith.constant 0 : index
    %c0_7 = arith.constant 0 : index
    %7 = vector.load %arg4[%c0_5, %c0_6, %c0_7] : memref<19x32x32xf32, #tpu.memory_space<vmem>>, vector<1x32x32xf32>
    %8 = vector.shape_cast %7 : vector<1x32x32xf32> to vector<32x32xf32>
    %c0_8 = arith.constant 0 : index
    %c0_9 = arith.constant 0 : index
    %c0_10 = arith.constant 0 : index
    %9 = vector.load %arg5[%c0_8, %c0_9, %c0_10] : memref<19x32x1xf32, #tpu.memory_space<vmem>>, vector<1x32x1xf32>
    %10 = vector.shape_cast %9 : vector<1x32x1xf32> to vector<32x1xf32>
    %cst_11 = arith.constant dense<0.000000e+00> : vector<32x128xf32>
    %11 = tpu.matmul %8, %6, %cst_11 {dimension_numbers = #tpu.dot_dimension_numbers<[1], [0], [0], [1], [0, 0, 1, 1], [], []>} : vector<32x32xf32>, vector<32x128xf32>, vector<32x128xf32> -> vector<32x128xf32>
    %12 = vector.broadcast %10 : vector<32x1xf32> to vector<32x128xf32>
    %13 = arith.addf %11, %12 : vector<32x128xf32>
    %14 = math.tanh %13 : vector<32x128xf32>
    %c1 = arith.constant 1 : index
    %c0_12 = arith.constant 0 : index
    %c0_13 = arith.constant 0 : index
    %15 = vector.load %arg4[%c1, %c0_12, %c0_13] : memref<19x32x32xf32, #tpu.memory_space<vmem>>, vector<1x32x32xf32>
    %16 = vector.shape_cast %15 : vector<1x32x32xf32> to vector<32x32xf32>
    %c1_14 = arith.constant 1 : index
    %c0_15 = arith.constant 0 : index
    %c0_16 = arith.constant 0 : index
    %17 = vector.load %arg5[%c1_14, %c0_15, %c0_16] : memref<19x32x1xf32, #tpu.memory_space<vmem>>, vector<1x32x1xf32>
    %18 = vector.shape_cast %17 : vector<1x32x1xf32> to vector<32x1xf32>
    %cst_17 = arith.constant dense<0.000000e+00> : vector<32x128xf32>
    %19 = tpu.matmul %16, %14, %cst_17 {dimension_numbers = #tpu.dot_dimension_numbers<[1], [0], [0], [1], [0, 0, 1, 1], [], []>} : vector<32x32xf32>, vector<32x128xf32>, vector<32x128xf32> -> vector<32x128xf32>
    %20 = vector.broadcast %18 : vector<32x1xf32> to vector<32x128xf32>
    %21 = arith.addf %19, %20 : vector<32x128xf32>
    %22 = math.tanh %21 : vector<32x128xf32>
    %c2 = arith.constant 2 : index
    %c0_18 = arith.constant 0 : index
    %c0_19 = arith.constant 0 : index
    %23 = vector.load %arg4[%c2, %c0_18, %c0_19] : memref<19x32x32xf32, #tpu.memory_space<vmem>>, vector<1x32x32xf32>
    %24 = vector.shape_cast %23 : vector<1x32x32xf32> to vector<32x32xf32>
    %c2_20 = arith.constant 2 : index
    %c0_21 = arith.constant 0 : index
    %c0_22 = arith.constant 0 : index
    %25 = vector.load %arg5[%c2_20, %c0_21, %c0_22] : memref<19x32x1xf32, #tpu.memory_space<vmem>>, vector<1x32x1xf32>
    %26 = vector.shape_cast %25 : vector<1x32x1xf32> to vector<32x1xf32>
    %cst_23 = arith.constant dense<0.000000e+00> : vector<32x128xf32>
    %27 = tpu.matmul %24, %22, %cst_23 {dimension_numbers = #tpu.dot_dimension_numbers<[1], [0], [0], [1], [0, 0, 1, 1], [], []>} : vector<32x32xf32>, vector<32x128xf32>, vector<32x128xf32> -> vector<32x128xf32>
    %28 = vector.broadcast %26 : vector<32x1xf32> to vector<32x128xf32>
    %29 = arith.addf %27, %28 : vector<32x128xf32>
    %30 = math.tanh %29 : vector<32x128xf32>
    %c3 = arith.constant 3 : index
    %c0_24 = arith.constant 0 : index
    %c0_25 = arith.constant 0 : index
    %31 = vector.load %arg4[%c3, %c0_24, %c0_25] : memref<19x32x32xf32, #tpu.memory_space<vmem>>, vector<1x32x32xf32>
    %32 = vector.shape_cast %31 : vector<1x32x32xf32> to vector<32x32xf32>
    %c3_26 = arith.constant 3 : index
    %c0_27 = arith.constant 0 : index
    %c0_28 = arith.constant 0 : index
    %33 = vector.load %arg5[%c3_26, %c0_27, %c0_28] : memref<19x32x1xf32, #tpu.memory_space<vmem>>, vector<1x32x1xf32>
    %34 = vector.shape_cast %33 : vector<1x32x1xf32> to vector<32x1xf32>
    %cst_29 = arith.constant dense<0.000000e+00> : vector<32x128xf32>
    %35 = tpu.matmul %32, %30, %cst_29 {dimension_numbers = #tpu.dot_dimension_numbers<[1], [0], [0], [1], [0, 0, 1, 1], [], []>} : vector<32x32xf32>, vector<32x128xf32>, vector<32x128xf32> -> vector<32x128xf32>
    %36 = vector.broadcast %34 : vector<32x1xf32> to vector<32x128xf32>
    %37 = arith.addf %35, %36 : vector<32x128xf32>
    %38 = math.tanh %37 : vector<32x128xf32>
    %c4 = arith.constant 4 : index
    %c0_30 = arith.constant 0 : index
    %c0_31 = arith.constant 0 : index
    %39 = vector.load %arg4[%c4, %c0_30, %c0_31] : memref<19x32x32xf32, #tpu.memory_space<vmem>>, vector<1x32x32xf32>
    %40 = vector.shape_cast %39 : vector<1x32x32xf32> to vector<32x32xf32>
    %c4_32 = arith.constant 4 : index
    %c0_33 = arith.constant 0 : index
    %c0_34 = arith.constant 0 : index
    %41 = vector.load %arg5[%c4_32, %c0_33, %c0_34] : memref<19x32x1xf32, #tpu.memory_space<vmem>>, vector<1x32x1xf32>
    %42 = vector.shape_cast %41 : vector<1x32x1xf32> to vector<32x1xf32>
    %cst_35 = arith.constant dense<0.000000e+00> : vector<32x128xf32>
    %43 = tpu.matmul %40, %38, %cst_35 {dimension_numbers = #tpu.dot_dimension_numbers<[1], [0], [0], [1], [0, 0, 1, 1], [], []>} : vector<32x32xf32>, vector<32x128xf32>, vector<32x128xf32> -> vector<32x128xf32>
    %44 = vector.broadcast %42 : vector<32x1xf32> to vector<32x128xf32>
    %45 = arith.addf %43, %44 : vector<32x128xf32>
    %46 = math.tanh %45 : vector<32x128xf32>
    %c5 = arith.constant 5 : index
    %c0_36 = arith.constant 0 : index
    %c0_37 = arith.constant 0 : index
    %47 = vector.load %arg4[%c5, %c0_36, %c0_37] : memref<19x32x32xf32, #tpu.memory_space<vmem>>, vector<1x32x32xf32>
    %48 = vector.shape_cast %47 : vector<1x32x32xf32> to vector<32x32xf32>
    %c5_38 = arith.constant 5 : index
    %c0_39 = arith.constant 0 : index
    %c0_40 = arith.constant 0 : index
    %49 = vector.load %arg5[%c5_38, %c0_39, %c0_40] : memref<19x32x1xf32, #tpu.memory_space<vmem>>, vector<1x32x1xf32>
    %50 = vector.shape_cast %49 : vector<1x32x1xf32> to vector<32x1xf32>
    %cst_41 = arith.constant dense<0.000000e+00> : vector<32x128xf32>
    %51 = tpu.matmul %48, %46, %cst_41 {dimension_numbers = #tpu.dot_dimension_numbers<[1], [0], [0], [1], [0, 0, 1, 1], [], []>} : vector<32x32xf32>, vector<32x128xf32>, vector<32x128xf32> -> vector<32x128xf32>
    %52 = vector.broadcast %50 : vector<32x1xf32> to vector<32x128xf32>
    %53 = arith.addf %51, %52 : vector<32x128xf32>
    %54 = math.tanh %53 : vector<32x128xf32>
    %c6 = arith.constant 6 : index
    %c0_42 = arith.constant 0 : index
    %c0_43 = arith.constant 0 : index
    %55 = vector.load %arg4[%c6, %c0_42, %c0_43] : memref<19x32x32xf32, #tpu.memory_space<vmem>>, vector<1x32x32xf32>
    %56 = vector.shape_cast %55 : vector<1x32x32xf32> to vector<32x32xf32>
    %c6_44 = arith.constant 6 : index
    %c0_45 = arith.constant 0 : index
    %c0_46 = arith.constant 0 : index
    %57 = vector.load %arg5[%c6_44, %c0_45, %c0_46] : memref<19x32x1xf32, #tpu.memory_space<vmem>>, vector<1x32x1xf32>
    %58 = vector.shape_cast %57 : vector<1x32x1xf32> to vector<32x1xf32>
    %cst_47 = arith.constant dense<0.000000e+00> : vector<32x128xf32>
    %59 = tpu.matmul %56, %54, %cst_47 {dimension_numbers = #tpu.dot_dimension_numbers<[1], [0], [0], [1], [0, 0, 1, 1], [], []>} : vector<32x32xf32>, vector<32x128xf32>, vector<32x128xf32> -> vector<32x128xf32>
    %60 = vector.broadcast %58 : vector<32x1xf32> to vector<32x128xf32>
    %61 = arith.addf %59, %60 : vector<32x128xf32>
    %62 = math.tanh %61 : vector<32x128xf32>
    %c7 = arith.constant 7 : index
    %c0_48 = arith.constant 0 : index
    %c0_49 = arith.constant 0 : index
    %63 = vector.load %arg4[%c7, %c0_48, %c0_49] : memref<19x32x32xf32, #tpu.memory_space<vmem>>, vector<1x32x32xf32>
    %64 = vector.shape_cast %63 : vector<1x32x32xf32> to vector<32x32xf32>
    %c7_50 = arith.constant 7 : index
    %c0_51 = arith.constant 0 : index
    %c0_52 = arith.constant 0 : index
    %65 = vector.load %arg5[%c7_50, %c0_51, %c0_52] : memref<19x32x1xf32, #tpu.memory_space<vmem>>, vector<1x32x1xf32>
    %66 = vector.shape_cast %65 : vector<1x32x1xf32> to vector<32x1xf32>
    %cst_53 = arith.constant dense<0.000000e+00> : vector<32x128xf32>
    %67 = tpu.matmul %64, %62, %cst_53 {dimension_numbers = #tpu.dot_dimension_numbers<[1], [0], [0], [1], [0, 0, 1, 1], [], []>} : vector<32x32xf32>, vector<32x128xf32>, vector<32x128xf32> -> vector<32x128xf32>
    %68 = vector.broadcast %66 : vector<32x1xf32> to vector<32x128xf32>
    %69 = arith.addf %67, %68 : vector<32x128xf32>
    %70 = math.tanh %69 : vector<32x128xf32>
    %c8 = arith.constant 8 : index
    %c0_54 = arith.constant 0 : index
    %c0_55 = arith.constant 0 : index
    %71 = vector.load %arg4[%c8, %c0_54, %c0_55] : memref<19x32x32xf32, #tpu.memory_space<vmem>>, vector<1x32x32xf32>
    %72 = vector.shape_cast %71 : vector<1x32x32xf32> to vector<32x32xf32>
    %c8_56 = arith.constant 8 : index
    %c0_57 = arith.constant 0 : index
    %c0_58 = arith.constant 0 : index
    %73 = vector.load %arg5[%c8_56, %c0_57, %c0_58] : memref<19x32x1xf32, #tpu.memory_space<vmem>>, vector<1x32x1xf32>
    %74 = vector.shape_cast %73 : vector<1x32x1xf32> to vector<32x1xf32>
    %cst_59 = arith.constant dense<0.000000e+00> : vector<32x128xf32>
    %75 = tpu.matmul %72, %70, %cst_59 {dimension_numbers = #tpu.dot_dimension_numbers<[1], [0], [0], [1], [0, 0, 1, 1], [], []>} : vector<32x32xf32>, vector<32x128xf32>, vector<32x128xf32> -> vector<32x128xf32>
    %76 = vector.broadcast %74 : vector<32x1xf32> to vector<32x128xf32>
    %77 = arith.addf %75, %76 : vector<32x128xf32>
    %78 = math.tanh %77 : vector<32x128xf32>
    %c9 = arith.constant 9 : index
    %c0_60 = arith.constant 0 : index
    %c0_61 = arith.constant 0 : index
    %79 = vector.load %arg4[%c9, %c0_60, %c0_61] : memref<19x32x32xf32, #tpu.memory_space<vmem>>, vector<1x32x32xf32>
    %80 = vector.shape_cast %79 : vector<1x32x32xf32> to vector<32x32xf32>
    %c9_62 = arith.constant 9 : index
    %c0_63 = arith.constant 0 : index
    %c0_64 = arith.constant 0 : index
    %81 = vector.load %arg5[%c9_62, %c0_63, %c0_64] : memref<19x32x1xf32, #tpu.memory_space<vmem>>, vector<1x32x1xf32>
    %82 = vector.shape_cast %81 : vector<1x32x1xf32> to vector<32x1xf32>
    %cst_65 = arith.constant dense<0.000000e+00> : vector<32x128xf32>
    %83 = tpu.matmul %80, %78, %cst_65 {dimension_numbers = #tpu.dot_dimension_numbers<[1], [0], [0], [1], [0, 0, 1, 1], [], []>} : vector<32x32xf32>, vector<32x128xf32>, vector<32x128xf32> -> vector<32x128xf32>
    %84 = vector.broadcast %82 : vector<32x1xf32> to vector<32x128xf32>
    %85 = arith.addf %83, %84 : vector<32x128xf32>
    %86 = math.tanh %85 : vector<32x128xf32>
    %c10 = arith.constant 10 : index
    %c0_66 = arith.constant 0 : index
    %c0_67 = arith.constant 0 : index
    %87 = vector.load %arg4[%c10, %c0_66, %c0_67] : memref<19x32x32xf32, #tpu.memory_space<vmem>>, vector<1x32x32xf32>
    %88 = vector.shape_cast %87 : vector<1x32x32xf32> to vector<32x32xf32>
    %c10_68 = arith.constant 10 : index
    %c0_69 = arith.constant 0 : index
    %c0_70 = arith.constant 0 : index
    %89 = vector.load %arg5[%c10_68, %c0_69, %c0_70] : memref<19x32x1xf32, #tpu.memory_space<vmem>>, vector<1x32x1xf32>
    %90 = vector.shape_cast %89 : vector<1x32x1xf32> to vector<32x1xf32>
    %cst_71 = arith.constant dense<0.000000e+00> : vector<32x128xf32>
    %91 = tpu.matmul %88, %86, %cst_71 {dimension_numbers = #tpu.dot_dimension_numbers<[1], [0], [0], [1], [0, 0, 1, 1], [], []>} : vector<32x32xf32>, vector<32x128xf32>, vector<32x128xf32> -> vector<32x128xf32>
    %92 = vector.broadcast %90 : vector<32x1xf32> to vector<32x128xf32>
    %93 = arith.addf %91, %92 : vector<32x128xf32>
    %94 = math.tanh %93 : vector<32x128xf32>
    %c11 = arith.constant 11 : index
    %c0_72 = arith.constant 0 : index
    %c0_73 = arith.constant 0 : index
    %95 = vector.load %arg4[%c11, %c0_72, %c0_73] : memref<19x32x32xf32, #tpu.memory_space<vmem>>, vector<1x32x32xf32>
    %96 = vector.shape_cast %95 : vector<1x32x32xf32> to vector<32x32xf32>
    %c11_74 = arith.constant 11 : index
    %c0_75 = arith.constant 0 : index
    %c0_76 = arith.constant 0 : index
    %97 = vector.load %arg5[%c11_74, %c0_75, %c0_76] : memref<19x32x1xf32, #tpu.memory_space<vmem>>, vector<1x32x1xf32>
    %98 = vector.shape_cast %97 : vector<1x32x1xf32> to vector<32x1xf32>
    %cst_77 = arith.constant dense<0.000000e+00> : vector<32x128xf32>
    %99 = tpu.matmul %96, %94, %cst_77 {dimension_numbers = #tpu.dot_dimension_numbers<[1], [0], [0], [1], [0, 0, 1, 1], [], []>} : vector<32x32xf32>, vector<32x128xf32>, vector<32x128xf32> -> vector<32x128xf32>
    %100 = vector.broadcast %98 : vector<32x1xf32> to vector<32x128xf32>
    %101 = arith.addf %99, %100 : vector<32x128xf32>
    %102 = math.tanh %101 : vector<32x128xf32>
    %c12 = arith.constant 12 : index
    %c0_78 = arith.constant 0 : index
    %c0_79 = arith.constant 0 : index
    %103 = vector.load %arg4[%c12, %c0_78, %c0_79] : memref<19x32x32xf32, #tpu.memory_space<vmem>>, vector<1x32x32xf32>
    %104 = vector.shape_cast %103 : vector<1x32x32xf32> to vector<32x32xf32>
    %c12_80 = arith.constant 12 : index
    %c0_81 = arith.constant 0 : index
    %c0_82 = arith.constant 0 : index
    %105 = vector.load %arg5[%c12_80, %c0_81, %c0_82] : memref<19x32x1xf32, #tpu.memory_space<vmem>>, vector<1x32x1xf32>
    %106 = vector.shape_cast %105 : vector<1x32x1xf32> to vector<32x1xf32>
    %cst_83 = arith.constant dense<0.000000e+00> : vector<32x128xf32>
    %107 = tpu.matmul %104, %102, %cst_83 {dimension_numbers = #tpu.dot_dimension_numbers<[1], [0], [0], [1], [0, 0, 1, 1], [], []>} : vector<32x32xf32>, vector<32x128xf32>, vector<32x128xf32> -> vector<32x128xf32>
    %108 = vector.broadcast %106 : vector<32x1xf32> to vector<32x128xf32>
    %109 = arith.addf %107, %108 : vector<32x128xf32>
    %110 = math.tanh %109 : vector<32x128xf32>
    %c13 = arith.constant 13 : index
    %c0_84 = arith.constant 0 : index
    %c0_85 = arith.constant 0 : index
    %111 = vector.load %arg4[%c13, %c0_84, %c0_85] : memref<19x32x32xf32, #tpu.memory_space<vmem>>, vector<1x32x32xf32>
    %112 = vector.shape_cast %111 : vector<1x32x32xf32> to vector<32x32xf32>
    %c13_86 = arith.constant 13 : index
    %c0_87 = arith.constant 0 : index
    %c0_88 = arith.constant 0 : index
    %113 = vector.load %arg5[%c13_86, %c0_87, %c0_88] : memref<19x32x1xf32, #tpu.memory_space<vmem>>, vector<1x32x1xf32>
    %114 = vector.shape_cast %113 : vector<1x32x1xf32> to vector<32x1xf32>
    %cst_89 = arith.constant dense<0.000000e+00> : vector<32x128xf32>
    %115 = tpu.matmul %112, %110, %cst_89 {dimension_numbers = #tpu.dot_dimension_numbers<[1], [0], [0], [1], [0, 0, 1, 1], [], []>} : vector<32x32xf32>, vector<32x128xf32>, vector<32x128xf32> -> vector<32x128xf32>
    %116 = vector.broadcast %114 : vector<32x1xf32> to vector<32x128xf32>
    %117 = arith.addf %115, %116 : vector<32x128xf32>
    %118 = math.tanh %117 : vector<32x128xf32>
    %c14 = arith.constant 14 : index
    %c0_90 = arith.constant 0 : index
    %c0_91 = arith.constant 0 : index
    %119 = vector.load %arg4[%c14, %c0_90, %c0_91] : memref<19x32x32xf32, #tpu.memory_space<vmem>>, vector<1x32x32xf32>
    %120 = vector.shape_cast %119 : vector<1x32x32xf32> to vector<32x32xf32>
    %c14_92 = arith.constant 14 : index
    %c0_93 = arith.constant 0 : index
    %c0_94 = arith.constant 0 : index
    %121 = vector.load %arg5[%c14_92, %c0_93, %c0_94] : memref<19x32x1xf32, #tpu.memory_space<vmem>>, vector<1x32x1xf32>
    %122 = vector.shape_cast %121 : vector<1x32x1xf32> to vector<32x1xf32>
    %cst_95 = arith.constant dense<0.000000e+00> : vector<32x128xf32>
    %123 = tpu.matmul %120, %118, %cst_95 {dimension_numbers = #tpu.dot_dimension_numbers<[1], [0], [0], [1], [0, 0, 1, 1], [], []>} : vector<32x32xf32>, vector<32x128xf32>, vector<32x128xf32> -> vector<32x128xf32>
    %124 = vector.broadcast %122 : vector<32x1xf32> to vector<32x128xf32>
    %125 = arith.addf %123, %124 : vector<32x128xf32>
    %126 = math.tanh %125 : vector<32x128xf32>
    %c15 = arith.constant 15 : index
    %c0_96 = arith.constant 0 : index
    %c0_97 = arith.constant 0 : index
    %127 = vector.load %arg4[%c15, %c0_96, %c0_97] : memref<19x32x32xf32, #tpu.memory_space<vmem>>, vector<1x32x32xf32>
    %128 = vector.shape_cast %127 : vector<1x32x32xf32> to vector<32x32xf32>
    %c15_98 = arith.constant 15 : index
    %c0_99 = arith.constant 0 : index
    %c0_100 = arith.constant 0 : index
    %129 = vector.load %arg5[%c15_98, %c0_99, %c0_100] : memref<19x32x1xf32, #tpu.memory_space<vmem>>, vector<1x32x1xf32>
    %130 = vector.shape_cast %129 : vector<1x32x1xf32> to vector<32x1xf32>
    %cst_101 = arith.constant dense<0.000000e+00> : vector<32x128xf32>
    %131 = tpu.matmul %128, %126, %cst_101 {dimension_numbers = #tpu.dot_dimension_numbers<[1], [0], [0], [1], [0, 0, 1, 1], [], []>} : vector<32x32xf32>, vector<32x128xf32>, vector<32x128xf32> -> vector<32x128xf32>
    %132 = vector.broadcast %130 : vector<32x1xf32> to vector<32x128xf32>
    %133 = arith.addf %131, %132 : vector<32x128xf32>
    %134 = math.tanh %133 : vector<32x128xf32>
    %c16 = arith.constant 16 : index
    %c0_102 = arith.constant 0 : index
    %c0_103 = arith.constant 0 : index
    %135 = vector.load %arg4[%c16, %c0_102, %c0_103] : memref<19x32x32xf32, #tpu.memory_space<vmem>>, vector<1x32x32xf32>
    %136 = vector.shape_cast %135 : vector<1x32x32xf32> to vector<32x32xf32>
    %c16_104 = arith.constant 16 : index
    %c0_105 = arith.constant 0 : index
    %c0_106 = arith.constant 0 : index
    %137 = vector.load %arg5[%c16_104, %c0_105, %c0_106] : memref<19x32x1xf32, #tpu.memory_space<vmem>>, vector<1x32x1xf32>
    %138 = vector.shape_cast %137 : vector<1x32x1xf32> to vector<32x1xf32>
    %cst_107 = arith.constant dense<0.000000e+00> : vector<32x128xf32>
    %139 = tpu.matmul %136, %134, %cst_107 {dimension_numbers = #tpu.dot_dimension_numbers<[1], [0], [0], [1], [0, 0, 1, 1], [], []>} : vector<32x32xf32>, vector<32x128xf32>, vector<32x128xf32> -> vector<32x128xf32>
    %140 = vector.broadcast %138 : vector<32x1xf32> to vector<32x128xf32>
    %141 = arith.addf %139, %140 : vector<32x128xf32>
    %142 = math.tanh %141 : vector<32x128xf32>
    %c17 = arith.constant 17 : index
    %c0_108 = arith.constant 0 : index
    %c0_109 = arith.constant 0 : index
    %143 = vector.load %arg4[%c17, %c0_108, %c0_109] : memref<19x32x32xf32, #tpu.memory_space<vmem>>, vector<1x32x32xf32>
    %144 = vector.shape_cast %143 : vector<1x32x32xf32> to vector<32x32xf32>
    %c17_110 = arith.constant 17 : index
    %c0_111 = arith.constant 0 : index
    %c0_112 = arith.constant 0 : index
    %145 = vector.load %arg5[%c17_110, %c0_111, %c0_112] : memref<19x32x1xf32, #tpu.memory_space<vmem>>, vector<1x32x1xf32>
    %146 = vector.shape_cast %145 : vector<1x32x1xf32> to vector<32x1xf32>
    %cst_113 = arith.constant dense<0.000000e+00> : vector<32x128xf32>
    %147 = tpu.matmul %144, %142, %cst_113 {dimension_numbers = #tpu.dot_dimension_numbers<[1], [0], [0], [1], [0, 0, 1, 1], [], []>} : vector<32x32xf32>, vector<32x128xf32>, vector<32x128xf32> -> vector<32x128xf32>
    %148 = vector.broadcast %146 : vector<32x1xf32> to vector<32x128xf32>
    %149 = arith.addf %147, %148 : vector<32x128xf32>
    %150 = math.tanh %149 : vector<32x128xf32>
    %c18 = arith.constant 18 : index
    %c0_114 = arith.constant 0 : index
    %c0_115 = arith.constant 0 : index
    %151 = vector.load %arg4[%c18, %c0_114, %c0_115] : memref<19x32x32xf32, #tpu.memory_space<vmem>>, vector<1x32x32xf32>
    %152 = vector.shape_cast %151 : vector<1x32x32xf32> to vector<32x32xf32>
    %c18_116 = arith.constant 18 : index
    %c0_117 = arith.constant 0 : index
    %c0_118 = arith.constant 0 : index
    %153 = vector.load %arg5[%c18_116, %c0_117, %c0_118] : memref<19x32x1xf32, #tpu.memory_space<vmem>>, vector<1x32x1xf32>
    %154 = vector.shape_cast %153 : vector<1x32x1xf32> to vector<32x1xf32>
    %cst_119 = arith.constant dense<0.000000e+00> : vector<32x128xf32>
    %155 = tpu.matmul %152, %150, %cst_119 {dimension_numbers = #tpu.dot_dimension_numbers<[1], [0], [0], [1], [0, 0, 1, 1], [], []>} : vector<32x32xf32>, vector<32x128xf32>, vector<32x128xf32> -> vector<32x128xf32>
    %156 = vector.broadcast %154 : vector<32x1xf32> to vector<32x128xf32>
    %157 = arith.addf %155, %156 : vector<32x128xf32>
    %158 = math.tanh %157 : vector<32x128xf32>
    %c0_120 = arith.constant 0 : index
    %c0_121 = arith.constant 0 : index
    %159 = vector.load %arg6[%c0_120, %c0_121] : memref<3x32xf32, #tpu.memory_space<vmem>>, vector<3x32xf32>
    %cst_122 = arith.constant dense<0.000000e+00> : vector<3x128xf32>
    %160 = tpu.matmul %159, %158, %cst_122 {dimension_numbers = #tpu.dot_dimension_numbers<[1], [0], [0], [1], [0, 0, 1, 1], [], []>} : vector<3x32xf32>, vector<32x128xf32>, vector<3x128xf32> -> vector<3x128xf32>
    %c0_123 = arith.constant 0 : index
    %c0_124 = arith.constant 0 : index
    %161 = vector.load %arg7[%c0_123, %c0_124] : memref<3x1xf32, #tpu.memory_space<vmem>>, vector<3x1xf32>
    %162 = vector.broadcast %161 : vector<3x1xf32> to vector<3x128xf32>
    %163 = arith.addf %160, %162 : vector<3x128xf32>
    %c0_125 = arith.constant 0 : index
    %c0_126 = arith.constant 0 : index
    %164 = vector.load %arg8[%c0_125, %c0_126] : memref<3x128xf32, #tpu.memory_space<vmem>>, vector<3x128xf32>
    tpu.vector_store %arg8[%c0_125, %c0_126], %163 {strides = array<i32>} : memref<3x128xf32, #tpu.memory_space<vmem>>, vector<3x128xf32>,
    return
  }
  func.func @transform_0(%arg0: i32) -> (i32, i32) {
    %c0_i32 = arith.constant 0 : i32
    %c0_i32_0 = arith.constant 0 : i32
    return %c0_i32, %arg0 : i32, i32
  }
  func.func @transform_1(%arg0: i32) -> (i32, i32) {
    %c0_i32 = arith.constant 0 : i32
    %c0_i32_0 = arith.constant 0 : i32
    %c0_i32_1 = arith.constant 0 : i32
    return %c0_i32, %c0_i32_0 : i32, i32
  }
  func.func @transform_2(%arg0: i32) -> (i32, i32) {
    %c0_i32 = arith.constant 0 : i32
    %c0_i32_0 = arith.constant 0 : i32
    %c0_i32_1 = arith.constant 0 : i32
    return %c0_i32, %c0_i32_0 : i32, i32
  }
  func.func @transform_3(%arg0: i32) -> (i32, i32, i32) {
    %c0_i32 = arith.constant 0 : i32
    %c0_i32_0 = arith.constant 0 : i32
    %c0_i32_1 = arith.constant 0 : i32
    %c0_i32_2 = arith.constant 0 : i32
    return %c0_i32, %c0_i32_0, %c0_i32_1 : i32, i32, i32
  }
  func.func @transform_4(%arg0: i32) -> (i32, i32, i32) {
    %c0_i32 = arith.constant 0 : i32
    %c0_i32_0 = arith.constant 0 : i32
    %c0_i32_1 = arith.constant 0 : i32
    %c0_i32_2 = arith.constant 0 : i32
    return %c0_i32, %c0_i32_0, %c0_i32_1 : i32, i32, i32
  }
  func.func @transform_5(%arg0: i32) -> (i32, i32) {
    %c0_i32 = arith.constant 0 : i32
    %c0_i32_0 = arith.constant 0 : i32
    %c0_i32_1 = arith.constant 0 : i32
    return %c0_i32, %c0_i32_0 : i32, i32
  }
  func.func @transform_6(%arg0: i32) -> (i32, i32) {
    %c0_i32 = arith.constant 0 : i32
    %c0_i32_0 = arith.constant 0 : i32
    %c0_i32_1 = arith.constant 0 : i32
    return %c0_i32, %c0_i32_0 : i32, i32
  }
  func.func @transform_7(%arg0: i32) -> (i32, i32) {
    %c0_i32 = arith.constant 0 : i32
    %c0_i32_0 = arith.constant 0 : i32
    return %c0_i32, %arg0 : i32, i32
  }
}

</mosaic_0001>

<bundles_post_ra>
// kernel: mlpconv_forward.1
= control target key start
LH: loop header
LB: loop body
LE: loop exit
PB: predicated region body
PF: predicated region fallthrough
CT: control target
= control target key end

     0   :  { %vm68_vm0 = vcmask 1041408   ;;  %vm55_vm1 = vcmask 15360   ;;  %v3572_v0 = vmov 0   ;;  %vm189_vm2 = vcmask 261120   ;;  %s4190_s2 = inlined_call_operand.vmem [shape: f32[32,1], index: 2, kind: input, shape index: {}]   ;;  %s4191_s0 = inlined_call_operand.vmem [shape: f32[2,128], index: 0, kind: input, shape index: {}]   ;;  %s4192_s1 = inlined_call_operand.vmem [shape: f32[32,2], index: 1, kind: input, shape index: {}]   ;;  %s4193_s4 = inlined_call_operand.vmem [shape: f32[19,32,1], index: 4, kind: input, shape index: {}]   ;;  %s4194_s3 = inlined_call_operand.vmem [shape: f32[19,32,32], index: 3, kind: input, shape index: {}]   ;;  %s4195_s6 = inlined_call_operand.vmem [shape: f32[3,1], index: 6, kind: input, shape index: {}]   ;;  %s4196_s5 = inlined_call_operand.vmem [shape: f32[3,32], index: 5, kind: input, shape index: {}]   ;;  %s4197_s7 = inlined_call_operand.vmem [shape: f32[3,128], index: 7, kind: output, shape index: {}]  }
   0x1   :  { %3411 = vset.pattern.permute.xlu1 %v3572_v0  ;;  %3410 = vset.pattern.permute.xlu0 %v3572_v0  ;;  %v34_v1 = vld [vmem:[%s4190_s2 + $0x18] sm:$0xff]  ;;  %v32_v2 = vld [vmem:[%s4190_s2 + $0x8] sm:$0xff]  ;;  %v26_v3 = vld [vmem:[%s4191_s0] sm:$0x3]  ;;  %vm3574_vm3 = vmmov 0  }
   0x2   :  { %52 = vperm.xlu0 %3410, %v34_v1   ;;  %42 = vperm.xlu1 %3411, %v32_v2   ;;  %v27_v4 = vld [vmem:[%s4192_s1] sm:$0xff]  ;;  %v28_v5 = vld [vmem:[%s4192_s1 + $0x8] sm:$0xff]  ;;  %v33_v6 = vld [vmem:[%s4190_s2 + $0x10] sm:$0xff] }
   0x3   :  { %3122 = vmatprep.subr.msk.mxu0 %vm68_vm0, %v26_v3  ;;  %3124 = vmatprep.mubr.msk.f32.mxu0 %vm55_vm1, %v27_v4  ;;  %v31_v7 = vld [vmem:[%s4190_s2] sm:$0xff]  ;;  %v29_v8 = vld [vmem:[%s4192_s1 + $0x10] sm:$0xff]  ;;  %v30_v9 = vld [vmem:[%s4192_s1 + $0x18] sm:$0xff] }
   0x4   :  { %3123 = vmatpush3.msk.msra.mxu0 %vm68_vm0, %v26_v3  ;;  %v168_v10 = vld [vmem:[%s4193_s4 + $0x18] sm:$0xff]  ;;  %v167_v11 = vld [vmem:[%s4193_s4 + $0x10] sm:$0xff]  ;;  %v166_v12 = vld [vmem:[%s4193_s4 + $0x8] sm:$0xff] }
   0x5   :  { %3125 = vmatmul.mubr.msk.f32.vlgmr.msra.gmra.mxu0 %vm55_vm1, %v28_v5  ;;  %v165_v13 = vld [vmem:[%s4193_s4] sm:$0xff]  ;;  %v2750_v14 = vld [vmem:[%s4193_s4 + $0x38] sm:$0xff]  ;;  %v2749_v15 = vld [vmem:[%s4193_s4 + $0x30] sm:$0xff] }
   0x6   :  { %47 = vperm.xlu0 %3410, %v33_v6   ;;  %37 = vperm.xlu1 %3411, %v31_v7   ;;  %v2748_v16 = vld [vmem:[%s4193_s4 + $0x28] sm:$0xff]  ;;  %v2747_v17 = vld [vmem:[%s4193_s4 + $0x20] sm:$0xff]  ;;  %v2762_v18 = vld [vmem:[%s4193_s4 + $0x58] sm:$0xff] }
   0x7   :  { %3127 = vmatprep.mubr.msk.f32.mxu0 %vm55_vm1, %v29_v8  ;;  %v2761_v19 = vld [vmem:[%s4193_s4 + $0x50] sm:$0xff]  ;;  %v2760_v20 = vld [vmem:[%s4193_s4 + $0x48] sm:$0xff]  ;;  %v2759_v21 = vld [vmem:[%s4193_s4 + $0x40] sm:$0xff] }
   0x8   :  { %v2774_v22 = vld [vmem:[%s4193_s4 + $0x78] sm:$0xff]  ;;  %v2773_v23 = vld [vmem:[%s4193_s4 + $0x70] sm:$0xff]  ;;  %v2772_v24 = vld [vmem:[%s4193_s4 + $0x68] sm:$0xff] }
   0x9   :  { %3128 = vmatmul.mubr.msk.f32.gmra.mxu0 %vm55_vm1, %v30_v9  ;;  %v2771_v25 = vld [vmem:[%s4193_s4 + $0x60] sm:$0xff]  ;;  %v2786_v26 = vld [vmem:[%s4193_s4 + $0x98] sm:$0xff]  ;;  %v2785_v27 = vld [vmem:[%s4193_s4 + $0x90] sm:$0xff] }
   0xa   :  { %186 = vperm.xlu0 %3410, %v168_v10   ;;  %181 = vperm.xlu1 %3411, %v167_v11   ;;  %v2784_v28 = vld [vmem:[%s4193_s4 + $0x88] sm:$0xff]  ;;  %v2783_v29 = vld [vmem:[%s4193_s4 + $0x80] sm:$0xff]  ;;  %v2798_v30 = vld [vmem:[%s4193_s4 + $0xb8] sm:$0xff] }
   0xb   :  { %v2797_v31 = vld [vmem:[%s4193_s4 + $0xb0] sm:$0xff]  ;;  %v2796_v32 = vld [vmem:[%s4193_s4 + $0xa8] sm:$0xff]  ;;  %v2795_v33 = vld [vmem:[%s4193_s4 + $0xa0] sm:$0xff] }
   0xc   :  { %v2810_v34 = vld [vmem:[%s4193_s4 + $0xd8] sm:$0xff]  ;;  %v2809_v35 = vld [vmem:[%s4193_s4 + $0xd0] sm:$0xff]  ;;  %v2808_v36 = vld [vmem:[%s4193_s4 + $0xc8] sm:$0xff] }
   0xd   :  { %v2807_v37 = vld [vmem:[%s4193_s4 + $0xc0] sm:$0xff]  ;;  %v2822_v38 = vld [vmem:[%s4193_s4 + $0xf8] sm:$0xff]  ;;  %v2821_v39 = vld [vmem:[%s4193_s4 + $0xf0] sm:$0xff] }
   0xe   :  { %176 = vperm.xlu0 %3410, %v166_v12   ;;  %171 = vperm.xlu1 %3411, %v165_v13   ;;  %v2820_v40 = vld [vmem:[%s4193_s4 + $0xe8] sm:$0xff]  ;;  %v2819_v41 = vld [vmem:[%s4193_s4 + $0xe0] sm:$0xff]  ;;  %v2834_v42 = vld [vmem:[%s4193_s4 + $0x118] sm:$0xff] }
   0xf   :  { %v2833_v43 = vld [vmem:[%s4193_s4 + $0x110] sm:$0xff]  ;;  %v2832_v44 = vld [vmem:[%s4193_s4 + $0x108] sm:$0xff]  ;;  %v2831_v45 = vld [vmem:[%s4193_s4 + $0x100] sm:$0xff] }
  0x10   :  { %v2846_v46 = vld [vmem:[%s4193_s4 + $0x138] sm:$0xff]  ;;  %v2845_v47 = vld [vmem:[%s4193_s4 + $0x130] sm:$0xff]  ;;  %v2844_v48 = vld [vmem:[%s4193_s4 + $0x128] sm:$0xff] }
  0x11   :  { %v2843_v49 = vld [vmem:[%s4193_s4 + $0x120] sm:$0xff]  ;;  %v2858_v50 = vld [vmem:[%s4193_s4 + $0x158] sm:$0xff]  ;;  %v2857_v51 = vld [vmem:[%s4193_s4 + $0x150] sm:$0xff] }
  0x12   :  { %318 = vperm.xlu0 %3410, %v2750_v14   ;;  %313 = vperm.xlu1 %3411, %v2749_v15   ;;  %v2856_v52 = vld [vmem:[%s4193_s4 + $0x148] sm:$0xff]  ;;  %v2855_v53 = vld [vmem:[%s4193_s4 + $0x140] sm:$0xff]  ;;  %v2870_v54 = vld [vmem:[%s4193_s4 + $0x178] sm:$0xff] }
  0x13   :  { %v2869_v55 = vld [vmem:[%s4193_s4 + $0x170] sm:$0xff]  ;;  %v161_v56 = vld [vmem:[%s4194_s3] sm:$0xff]  ;;  %v2868_v57 = vld [vmem:[%s4193_s4 + $0x168] sm:$0xff] }
  0x14   :  { %3138 = vmatprep.mubr.msk.f32.mxu1 %vm189_vm2, %v161_v56  ;;  %v2867_v58 = vld [vmem:[%s4193_s4 + $0x160] sm:$0xff]  ;;  %v2882_v59 = vld [vmem:[%s4193_s4 + $0x198] sm:$0xff]  ;;  %v2881_v60 = vld [vmem:[%s4193_s4 + $0x190] sm:$0xff] }
  0x15   :  { %v2880_v61 = vld [vmem:[%s4193_s4 + $0x188] sm:$0xff]  ;;  %v2879_v62 = vld [vmem:[%s4193_s4 + $0x180] sm:$0xff]  ;;  %v2894_v63 = vld [vmem:[%s4193_s4 + $0x1b8] sm:$0xff] }
  0x16   :  { %308 = vperm.xlu0 %3410, %v2748_v16   ;;  %303 = vperm.xlu1 %3411, %v2747_v17   ;;  %v2893_v0 = vld [vmem:[%s4193_s4 + $0x1b0] sm:$0xff]  ;;  %v2892_v1 = vld [vmem:[%s4193_s4 + $0x1a8] sm:$0xff]  ;;  %v2891_v2 = vld [vmem:[%s4193_s4 + $0x1a0] sm:$0xff] }
  0x17   :  { %v2906_v3 = vld [vmem:[%s4193_s4 + $0x1d8] sm:$0xff]  ;;  %v2905_v4 = vld [vmem:[%s4193_s4 + $0x1d0] sm:$0xff]  ;;  %v2904_v5 = vld [vmem:[%s4193_s4 + $0x1c8] sm:$0xff] }
  0x18   :  { %v2903_v6 = vld [vmem:[%s4193_s4 + $0x1c0] sm:$0xff]  ;;  %v2918_v7 = vld [vmem:[%s4193_s4 + $0x1f8] sm:$0xff]  ;;  %v2917_v8 = vld [vmem:[%s4193_s4 + $0x1f0] sm:$0xff] }
  0x19   :  { %v2916_v9 = vld [vmem:[%s4193_s4 + $0x1e8] sm:$0xff]  ;;  %v2915_v10 = vld [vmem:[%s4193_s4 + $0x1e0] sm:$0xff]  ;;  %v2930_v11 = vld [vmem:[%s4193_s4 + $0x218] sm:$0xff] }
  0x1a   :  { %449 = vperm.xlu0 %3410, %v2762_v18   ;;  %444 = vperm.xlu1 %3411, %v2761_v19   ;;  %v2929_v12 = vld [vmem:[%s4193_s4 + $0x210] sm:$0xff]  ;;  %v2928_v13 = vld [vmem:[%s4193_s4 + $0x208] sm:$0xff]  ;;  %v2927_v14 = vld [vmem:[%s4193_s4 + $0x200] sm:$0xff] }
  0x1b   :  { %v2942_v15 = vld [vmem:[%s4193_s4 + $0x238] sm:$0xff]  ;;  %v2941_v16 = vld [vmem:[%s4193_s4 + $0x230] sm:$0xff]  ;;  %v2940_v17 = vld [vmem:[%s4193_s4 + $0x228] sm:$0xff] }
  0x1c   :  { %v2939_v18 = vld [vmem:[%s4193_s4 + $0x220] sm:$0xff]  ;;  %v2954_v19 = vld [vmem:[%s4193_s4 + $0x258] sm:$0xff] }
  0x1e   :  { %439 = vperm.xlu0 %3410, %v2760_v20   ;;  %434 = vperm.xlu1 %3411, %v2759_v21   ;;  %v2953_v20 = vld [vmem:[%s4193_s4 + $0x250] sm:$0xff]  ;;  %v2952_v21 = vld [vmem:[%s4193_s4 + $0x248] sm:$0xff] }
  0x22   :  { %580 = vperm.xlu0 %3410, %v2774_v22   ;;  %575 = vperm.xlu1 %3411, %v2773_v23   ;;  %v2951_v22 = vld [vmem:[%s4193_s4 + $0x240] sm:$0xff] }
  0x23   :  { %v2650_v23 = vld [vmem:[%s4195_s6] sm:$0x7] }
  0x26   :  { %570 = vperm.xlu0 %3410, %v2772_v24   ;;  %565 = vperm.xlu1 %3411, %v2771_v25  }
  0x2a   :  { %711 = vperm.xlu0 %3410, %v2786_v26   ;;  %706 = vperm.xlu1 %3411, %v2785_v27  }
  0x2e   :  { %701 = vperm.xlu0 %3410, %v2784_v28   ;;  %696 = vperm.xlu1 %3411, %v2783_v29  }
  0x32   :  { %842 = vperm.xlu0 %3410, %v2798_v30   ;;  %837 = vperm.xlu1 %3411, %v2797_v31  }
  0x36   :  { %832 = vperm.xlu0 %3410, %v2796_v32   ;;  %827 = vperm.xlu1 %3411, %v2795_v33  }
  0x3a   :  { %973 = vperm.xlu0 %3410, %v2810_v34   ;;  %968 = vperm.xlu1 %3411, %v2809_v35  }
  0x3e   :  { %963 = vperm.xlu0 %3410, %v2808_v36   ;;  %958 = vperm.xlu1 %3411, %v2807_v37  }
  0x42   :  { %1104 = vperm.xlu0 %3410, %v2822_v38   ;;  %1099 = vperm.xlu1 %3411, %v2821_v39  }
  0x46   :  { %1094 = vperm.xlu0 %3410, %v2820_v40   ;;  %1089 = vperm.xlu1 %3411, %v2819_v41   ;;  %v162_v40 = vld [vmem:[%s4194_s3 + $0x8] sm:$0xff]  ;;  %v163_v41 = vld [vmem:[%s4194_s3 + $0x10] sm:$0xff] }
  0x4a   :  { %1235 = vperm.xlu0 %3410, %v2834_v42   ;;  %1230 = vperm.xlu1 %3411, %v2833_v43   ;;  %v164_v42 = vld [vmem:[%s4194_s3 + $0x18] sm:$0xff]  ;;  %v2743_v43 = vld [vmem:[%s4194_s3 + $0x20] sm:$0xff] }
  0x4b   :  { %3152 = vmatprep.mubr.msk.f32.mxu0 %vm189_vm2, %v2743_v43 }
  0x4e   :  { %1225 = vperm.xlu0 %3410, %v2832_v44   ;;  %1220 = vperm.xlu1 %3411, %v2831_v45  }
  0x52   :  { %1366 = vperm.xlu0 %3410, %v2846_v46   ;;  %1361 = vperm.xlu1 %3411, %v2845_v47  }
  0x56   :  { %1356 = vperm.xlu0 %3410, %v2844_v48   ;;  %1351 = vperm.xlu1 %3411, %v2843_v49  }
  0x5a   :  { %1497 = vperm.xlu0 %3410, %v2858_v50   ;;  %1492 = vperm.xlu1 %3411, %v2857_v51  }
  0x5e   :  { %1487 = vperm.xlu0 %3410, %v2856_v52   ;;  %1482 = vperm.xlu1 %3411, %v2855_v53  }
  0x62   :  { %1628 = vperm.xlu0 %3410, %v2870_v54   ;;  %1623 = vperm.xlu1 %3411, %v2869_v55  }
  0x66   :  { %1618 = vperm.xlu0 %3410, %v2868_v57   ;;  %1613 = vperm.xlu1 %3411, %v2867_v58  }
  0x6a   :  { %1759 = vperm.xlu0 %3410, %v2882_v59   ;;  %1754 = vperm.xlu1 %3411, %v2881_v60   ;;  %v2744_v60 = vld [vmem:[%s4194_s3 + $0x28] sm:$0xff] }
  0x6e   :  { %1749 = vperm.xlu0 %3410, %v2880_v61   ;;  %1744 = vperm.xlu1 %3411, %v2879_v62   ;;  %v2745_v61 = vld [vmem:[%s4194_s3 + $0x30] sm:$0xff]  ;;  %v2746_v62 = vld [vmem:[%s4194_s3 + $0x38] sm:$0xff] }
  0x72   :  { %1890 = vperm.xlu0 %3410, %v2894_v63   ;;  %1885 = vperm.xlu1 %3411, %v2893_v0   ;;  %v2755_v63 = vld [vmem:[%s4194_s3 + $0x40] sm:$0xff] }
  0x76   :  { %1880 = vperm.xlu0 %3410, %v2892_v1   ;;  %1875 = vperm.xlu1 %3411, %v2891_v2  }
  0x7a   :  { %2021 = vperm.xlu0 %3410, %v2906_v3   ;;  %2016 = vperm.xlu1 %3411, %v2905_v4  }
  0x7d   :  { %v53_v24 = vpop.permute.xlu0 %52  ;;  %v43_v26 = vpop.permute.xlu1 %42 }
  0x7e   :  { %2011 = vperm.xlu0 %3410, %v2904_v5   ;;  %2006 = vperm.xlu1 %3411, %v2903_v6  }
  0x81   :  { %v48_v30 = vpop.permute.xlu0 %47  ;;  %v38_v34 = vpop.permute.xlu1 %37 }
  0x82   :  { %2152 = vperm.xlu0 %3410, %v2918_v7   ;;  %2147 = vperm.xlu1 %3411, %v2917_v8  }
  0x85   :  { %v187_v44 = vpop.permute.xlu0 %186  ;;  %v182_v46 = vpop.permute.xlu1 %181 }
  0x86   :  { %2142 = vperm.xlu0 %3410, %v2916_v9   ;;  %2137 = vperm.xlu1 %3411, %v2915_v10  }
  0x89   :  { %v177_v50 = vpop.permute.xlu0 %176  ;;  %v172_v54 = vpop.permute.xlu1 %171 }
  0x8a   :  { %2283 = vperm.xlu0 %3410, %v2930_v11   ;;  %2278 = vperm.xlu1 %3411, %v2929_v12  }
  0x8d   :  { %v319_v0 = vpop.permute.xlu0 %318  ;;  %v314_v2 = vpop.permute.xlu1 %313 }
  0x8e   :  { %2273 = vperm.xlu0 %3410, %v2928_v13   ;;  %2268 = vperm.xlu1 %3411, %v2927_v14  }
  0x91   :  { %v309_v6 = vpop.permute.xlu0 %308  ;;  %v304_v10 = vpop.permute.xlu1 %303 }
  0x92   :  { %2414 = vperm.xlu0 %3410, %v2942_v15   ;;  %2409 = vperm.xlu1 %3411, %v2941_v16   ;;  %v2756_v16 = vld [vmem:[%s4194_s3 + $0x48] sm:$0xff] }
  0x96   :  { %2404 = vperm.xlu0 %3410, %v2940_v17   ;;  %2399 = vperm.xlu1 %3411, %v2939_v18   ;;  %v2757_v17 = vld [vmem:[%s4194_s3 + $0x50] sm:$0xff]  ;;  %v2758_v18 = vld [vmem:[%s4194_s3 + $0x58] sm:$0xff] }
  0x9a   :  { %2545 = vperm.xlu0 %3410, %v2954_v19   ;;  %2540 = vperm.xlu1 %3411, %v2953_v20   ;;  %v2767_v19 = vld [vmem:[%s4194_s3 + $0x60] sm:$0xff]  ;;  %v450_v20 = vpop.permute.xlu0 %449 }
  0x9e   :  { %2535 = vperm.xlu0 %3410, %v2952_v21   ;;  %2530 = vperm.xlu1 %3411, %v2951_v22   ;;  %v445_v22 = vpop.permute.xlu1 %444 }
  0xa2   :  { %2653 = vperm.xlu0 %3410, %v2650_v23  }
  0xc5   :  { %v3126_v25 = vpop.f32.mrf.mxu0 }
  0xc6   :  { %v144_v32 = vadd.f32 %v3126_v25, %v43_v26  ;;  %v440_v26 = vpop.permute.xlu0 %439 }
  0xc7   :  { %v138_v27 = vpop.f32.mrf.mxu0 }
  0xc8   :  { %v139_v35 = vadd.f32 %v138_v27, %v38_v34 }
  0xc9   :  { %v3129_v28 = vpop.f32.mrf.mxu0 }
  0xca   :  { %v154_v29 = vadd.f32 %v3129_v28, %v53_v24 }
  0xcb   :  { %v148_v31 = vpop.f32.mrf.mxu0 }
  0xcc   :  { %3412 = vtanh.f32 %v154_v29  ;;  %v149_v33 = vadd.f32 %v148_v31, %v48_v30  ;;  %v435_v30 = vpop.permute.xlu1 %434 }
  0xce   :  { %3414 = vtanh.f32 %v149_v33 }
  0xcf   :  { %3416 = vtanh.f32 %v144_v32 }
  0xd0   :  { %3418 = vtanh.f32 %v139_v35 }
  0xd9   :  { %v3413_v36 = vpop.eup %3412 }
  0xda   :  { %3130 = vmatprep.subr.mxu1 %v3413_v36 }
  0xdb   :  { %v3415_v37 = vpop.eup %3414  ;;  %3131 = vmatpush3.msra.mxu1 %v3413_v36  ;;  %v2768_v36 = vld [vmem:[%s4194_s3 + $0x68] sm:$0xff] }
  0xdc   :  { %3132 = vmatprep.subr.mxu1 %v3415_v37  ;;  %v3417_v38 = vpop.eup %3416 }
  0xdd   :  { %3133 = vmatpush3.msra.mxu1 %v3415_v37  ;;  %v3419_v39 = vpop.eup %3418  ;;  %v2769_v37 = vld [vmem:[%s4194_s3 + $0x70] sm:$0xff] }
  0xde   :  { %3134 = vmatprep.subr.mxu1 %v3417_v38 }
  0xdf   :  { %3135 = vmatpush3.msra.mxu1 %v3417_v38  ;;  %v2770_v38 = vld [vmem:[%s4194_s3 + $0x78] sm:$0xff] }
  0xe0   :  { %3136 = vmatprep.subr.mxu1 %v3419_v39 }
  0xe1   :  { %3137 = vmatpush3.msra.mxu1 %v3419_v39  ;;  %v2779_v39 = vld [vmem:[%s4194_s3 + $0x80] sm:$0xff] }
  0xe2   :  { %3139 = vmatmul.mubr.msk.f32.vlgmr.msra.gmra.mxu1 %vm189_vm2, %v162_v40  ;;  %v581_v40 = vpop.permute.xlu0 %580 }
  0xe3   :  { %3141 = vmatprep.mubr.msk.f32.mxu1 %vm189_vm2, %v163_v41 }
  0xe6   :  { %3142 = vmatmul.mubr.msk.f32.gmra.mxu1 %vm189_vm2, %v164_v42  ;;  %v576_v42 = vpop.permute.xlu1 %575 }
  0xe7   :  { %3166 = vmatprep.mubr.msk.f32.mxu1 %vm189_vm2, %v2755_v63 }
 0x1a2   :  { %v3140_v45 = vpop.f32.mrf.mxu1 }
 0x1a3   :  { %v274_v52 = vadd.f32 %v3140_v45, %v177_v50  ;;  %v566_v50 = vpop.permute.xlu1 %565 }
 0x1a4   :  { %v268_v47 = vpop.f32.mrf.mxu1 }
 0x1a5   :  { %v269_v55 = vadd.f32 %v268_v47, %v172_v54 }
 0x1a6   :  { %v3143_v48 = vpop.f32.mrf.mxu1 }
 0x1a7   :  { %v284_v49 = vadd.f32 %v3143_v48, %v187_v44 }
 0x1a8   :  { %v278_v51 = vpop.f32.mrf.mxu1 }
 0x1a9   :  { %3420 = vtanh.f32 %v284_v49  ;;  %v279_v53 = vadd.f32 %v278_v51, %v182_v46  ;;  %v571_v46 = vpop.permute.xlu0 %570 }
 0x1ab   :  { %3422 = vtanh.f32 %v279_v53 }
 0x1ac   :  { %3424 = vtanh.f32 %v274_v52 }
 0x1ad   :  { %3426 = vtanh.f32 %v269_v55 }
 0x1b6   :  { %v3421_v56 = vpop.eup %3420 }
 0x1b7   :  { %3144 = vmatprep.subr.mxu0 %v3421_v56 }
 0x1b8   :  { %v3423_v57 = vpop.eup %3422  ;;  %3145 = vmatpush3.msra.mxu0 %v3421_v56  ;;  %v2780_v56 = vld [vmem:[%s4194_s3 + $0x88] sm:$0xff] }
 0x1b9   :  { %3146 = vmatprep.subr.mxu0 %v3423_v57  ;;  %v3425_v58 = vpop.eup %3424 }
 0x1ba   :  { %3147 = vmatpush3.msra.mxu0 %v3423_v57  ;;  %v3427_v59 = vpop.eup %3426  ;;  %v2781_v57 = vld [vmem:[%s4194_s3 + $0x90] sm:$0xff] }
 0x1bb   :  { %3148 = vmatprep.subr.mxu0 %v3425_v58 }
 0x1bc   :  { %3149 = vmatpush3.msra.mxu0 %v3425_v58  ;;  %v2782_v58 = vld [vmem:[%s4194_s3 + $0x98] sm:$0xff] }
 0x1bd   :  { %3150 = vmatprep.subr.mxu0 %v3427_v59 }
 0x1be   :  { %3151 = vmatpush3.msra.mxu0 %v3427_v59  ;;  %v2791_v59 = vld [vmem:[%s4194_s3 + $0xa0] sm:$0xff] }
 0x1bf   :  { %3153 = vmatmul.mubr.msk.f32.vlgmr.msra.gmra.mxu0 %vm189_vm2, %v2744_v60  ;;  %v712_v60 = vpop.permute.xlu0 %711 }
 0x1c0   :  { %3155 = vmatprep.mubr.msk.f32.mxu0 %vm189_vm2, %v2745_v61 }
 0x1c3   :  { %3156 = vmatmul.mubr.msk.f32.gmra.mxu0 %vm189_vm2, %v2746_v62  ;;  %v707_v62 = vpop.permute.xlu1 %706 }
 0x1c4   :  { %3180 = vmatprep.mubr.msk.f32.mxu0 %vm189_vm2, %v2767_v19 }
 0x27f   :  { %v3154_v1 = vpop.f32.mrf.mxu0 }
 0x280   :  { %v405_v8 = vadd.f32 %v3154_v1, %v309_v6  ;;  %v697_v6 = vpop.permute.xlu1 %696 }
 0x281   :  { %v399_v3 = vpop.f32.mrf.mxu0 }
 0x282   :  { %v400_v11 = vadd.f32 %v399_v3, %v304_v10 }
 0x283   :  { %v3157_v4 = vpop.f32.mrf.mxu0 }
 0x284   :  { %v415_v5 = vadd.f32 %v3157_v4, %v319_v0 }
 0x285   :  { %v409_v7 = vpop.f32.mrf.mxu0 }
 0x286   :  { %3428 = vtanh.f32 %v415_v5  ;;  %v410_v9 = vadd.f32 %v409_v7, %v314_v2  ;;  %v702_v2 = vpop.permute.xlu0 %701 }
 0x288   :  { %3430 = vtanh.f32 %v410_v9 }
 0x289   :  { %3432 = vtanh.f32 %v405_v8 }
 0x28a   :  { %3434 = vtanh.f32 %v400_v11 }
 0x293   :  { %v3429_v12 = vpop.eup %3428 }
 0x294   :  { %3158 = vmatprep.subr.mxu1 %v3429_v12 }
 0x295   :  { %v3431_v13 = vpop.eup %3430  ;;  %3159 = vmatpush3.msra.mxu1 %v3429_v12  ;;  %v2792_v12 = vld [vmem:[%s4194_s3 + $0xa8] sm:$0xff] }
 0x296   :  { %3160 = vmatprep.subr.mxu1 %v3431_v13  ;;  %v3433_v14 = vpop.eup %3432 }
 0x297   :  { %3161 = vmatpush3.msra.mxu1 %v3431_v13  ;;  %v3435_v15 = vpop.eup %3434  ;;  %v2793_v13 = vld [vmem:[%s4194_s3 + $0xb0] sm:$0xff] }
 0x298   :  { %3162 = vmatprep.subr.mxu1 %v3433_v14 }
 0x299   :  { %3163 = vmatpush3.msra.mxu1 %v3433_v14  ;;  %v2794_v14 = vld [vmem:[%s4194_s3 + $0xb8] sm:$0xff] }
 0x29a   :  { %3164 = vmatprep.subr.mxu1 %v3435_v15 }
 0x29b   :  { %3165 = vmatpush3.msra.mxu1 %v3435_v15  ;;  %v2803_v15 = vld [vmem:[%s4194_s3 + $0xc0] sm:$0xff] }
 0x29c   :  { %3167 = vmatmul.mubr.msk.f32.vlgmr.msra.gmra.mxu1 %vm189_vm2, %v2756_v16  ;;  %v843_v16 = vpop.permute.xlu0 %842 }
 0x29d   :  { %3169 = vmatprep.mubr.msk.f32.mxu1 %vm189_vm2, %v2757_v17 }
 0x2a0   :  { %3170 = vmatmul.mubr.msk.f32.gmra.mxu1 %vm189_vm2, %v2758_v18  ;;  %v838_v18 = vpop.permute.xlu1 %837 }
 0x2a1   :  { %3194 = vmatprep.mubr.msk.f32.mxu1 %vm189_vm2, %v2779_v39 }
 0x35c   :  { %v3168_v21 = vpop.f32.mrf.mxu1 }
 0x35d   :  { %v536_v28 = vadd.f32 %v3168_v21, %v440_v26  ;;  %v828_v26 = vpop.permute.xlu1 %827 }
 0x35e   :  { %v530_v23 = vpop.f32.mrf.mxu1 }
 0x35f   :  { %v531_v31 = vadd.f32 %v530_v23, %v435_v30 }
 0x360   :  { %v3171_v24 = vpop.f32.mrf.mxu1 }
 0x361   :  { %v546_v25 = vadd.f32 %v3171_v24, %v450_v20 }
 0x362   :  { %v540_v27 = vpop.f32.mrf.mxu1 }
 0x363   :  { %3436 = vtanh.f32 %v546_v25  ;;  %v541_v29 = vadd.f32 %v540_v27, %v445_v22  ;;  %v833_v22 = vpop.permute.xlu0 %832 }
 0x365   :  { %3438 = vtanh.f32 %v541_v29 }
 0x366   :  { %3440 = vtanh.f32 %v536_v28 }
 0x367   :  { %3442 = vtanh.f32 %v531_v31 }
 0x370   :  { %v3437_v32 = vpop.eup %3436 }
 0x371   :  { %3172 = vmatprep.subr.mxu0 %v3437_v32 }
 0x372   :  { %v3439_v33 = vpop.eup %3438  ;;  %3173 = vmatpush3.msra.mxu0 %v3437_v32  ;;  %v2804_v32 = vld [vmem:[%s4194_s3 + $0xc8] sm:$0xff] }
 0x373   :  { %3174 = vmatprep.subr.mxu0 %v3439_v33  ;;  %v3441_v34 = vpop.eup %3440 }
 0x374   :  { %3175 = vmatpush3.msra.mxu0 %v3439_v33  ;;  %v3443_v35 = vpop.eup %3442  ;;  %v2805_v33 = vld [vmem:[%s4194_s3 + $0xd0] sm:$0xff] }
 0x375   :  { %3176 = vmatprep.subr.mxu0 %v3441_v34 }
 0x376   :  { %3177 = vmatpush3.msra.mxu0 %v3441_v34  ;;  %v2806_v34 = vld [vmem:[%s4194_s3 + $0xd8] sm:$0xff] }
 0x377   :  { %3178 = vmatprep.subr.mxu0 %v3443_v35 }
 0x378   :  { %3179 = vmatpush3.msra.mxu0 %v3443_v35  ;;  %v2815_v35 = vld [vmem:[%s4194_s3 + $0xe0] sm:$0xff] }
 0x379   :  { %3181 = vmatmul.mubr.msk.f32.vlgmr.msra.gmra.mxu0 %vm189_vm2, %v2768_v36  ;;  %v974_v36 = vpop.permute.xlu0 %973 }
 0x37a   :  { %3183 = vmatprep.mubr.msk.f32.mxu0 %vm189_vm2, %v2769_v37 }
 0x37d   :  { %3184 = vmatmul.mubr.msk.f32.gmra.mxu0 %vm189_vm2, %v2770_v38  ;;  %v969_v38 = vpop.permute.xlu1 %968 }
 0x37e   :  { %3208 = vmatprep.mubr.msk.f32.mxu0 %vm189_vm2, %v2791_v59 }
 0x439   :  { %v3182_v41 = vpop.f32.mrf.mxu0 }
 0x43a   :  { %v667_v48 = vadd.f32 %v3182_v41, %v571_v46  ;;  %v959_v46 = vpop.permute.xlu1 %958 }
 0x43b   :  { %v661_v43 = vpop.f32.mrf.mxu0 }
 0x43c   :  { %v662_v51 = vadd.f32 %v661_v43, %v566_v50 }
 0x43d   :  { %v3185_v44 = vpop.f32.mrf.mxu0 }
 0x43e   :  { %v677_v45 = vadd.f32 %v3185_v44, %v581_v40 }
 0x43f   :  { %v671_v47 = vpop.f32.mrf.mxu0 }
 0x440   :  { %3444 = vtanh.f32 %v677_v45  ;;  %v672_v49 = vadd.f32 %v671_v47, %v576_v42  ;;  %v964_v42 = vpop.permute.xlu0 %963 }
 0x442   :  { %3446 = vtanh.f32 %v672_v49 }
 0x443   :  { %3448 = vtanh.f32 %v667_v48 }
 0x444   :  { %3450 = vtanh.f32 %v662_v51 }
 0x44d   :  { %v3445_v52 = vpop.eup %3444 }
 0x44e   :  { %3186 = vmatprep.subr.mxu1 %v3445_v52 }
 0x44f   :  { %v3447_v53 = vpop.eup %3446  ;;  %3187 = vmatpush3.msra.mxu1 %v3445_v52  ;;  %v2816_v52 = vld [vmem:[%s4194_s3 + $0xe8] sm:$0xff] }
 0x450   :  { %3188 = vmatprep.subr.mxu1 %v3447_v53  ;;  %v3449_v54 = vpop.eup %3448 }
 0x451   :  { %3189 = vmatpush3.msra.mxu1 %v3447_v53  ;;  %v3451_v55 = vpop.eup %3450  ;;  %v2817_v53 = vld [vmem:[%s4194_s3 + $0xf0] sm:$0xff] }
 0x452   :  { %3190 = vmatprep.subr.mxu1 %v3449_v54 }
 0x453   :  { %3191 = vmatpush3.msra.mxu1 %v3449_v54  ;;  %v2818_v54 = vld [vmem:[%s4194_s3 + $0xf8] sm:$0xff] }
 0x454   :  { %3192 = vmatprep.subr.mxu1 %v3451_v55 }
 0x455   :  { %3193 = vmatpush3.msra.mxu1 %v3451_v55  ;;  %v2827_v55 = vld [vmem:[%s4194_s3 + $0x100] sm:$0xff] }
 0x456   :  { %3195 = vmatmul.mubr.msk.f32.vlgmr.msra.gmra.mxu1 %vm189_vm2, %v2780_v56  ;;  %v1105_v56 = vpop.permute.xlu0 %1104 }
 0x457   :  { %3197 = vmatprep.mubr.msk.f32.mxu1 %vm189_vm2, %v2781_v57 }
 0x45a   :  { %3198 = vmatmul.mubr.msk.f32.gmra.mxu1 %vm189_vm2, %v2782_v58  ;;  %v1100_v58 = vpop.permute.xlu1 %1099 }
 0x45b   :  { %3222 = vmatprep.mubr.msk.f32.mxu1 %vm189_vm2, %v2803_v15 }
 0x516   :  { %v3196_v61 = vpop.f32.mrf.mxu1 }
 0x517   :  { %v798_v4 = vadd.f32 %v3196_v61, %v702_v2  ;;  %v1090_v2 = vpop.permute.xlu1 %1089 }
 0x518   :  { %v792_v63 = vpop.f32.mrf.mxu1 }
 0x519   :  { %v793_v7 = vadd.f32 %v792_v63, %v697_v6 }
 0x51a   :  { %v3199_v0 = vpop.f32.mrf.mxu1 }
 0x51b   :  { %v808_v1 = vadd.f32 %v3199_v0, %v712_v60 }
 0x51c   :  { %v802_v3 = vpop.f32.mrf.mxu1 }
 0x51d   :  { %3452 = vtanh.f32 %v808_v1  ;;  %v803_v5 = vadd.f32 %v802_v3, %v707_v62  ;;  %v1095_v62 = vpop.permute.xlu0 %1094 }
 0x51f   :  { %3454 = vtanh.f32 %v803_v5 }
 0x520   :  { %3456 = vtanh.f32 %v798_v4 }
 0x521   :  { %3458 = vtanh.f32 %v793_v7 }
 0x52a   :  { %v3453_v8 = vpop.eup %3452 }
 0x52b   :  { %3200 = vmatprep.subr.mxu0 %v3453_v8 }
 0x52c   :  { %v3455_v9 = vpop.eup %3454  ;;  %3201 = vmatpush3.msra.mxu0 %v3453_v8  ;;  %v2828_v8 = vld [vmem:[%s4194_s3 + $0x108] sm:$0xff] }
 0x52d   :  { %3202 = vmatprep.subr.mxu0 %v3455_v9  ;;  %v3457_v10 = vpop.eup %3456 }
 0x52e   :  { %3203 = vmatpush3.msra.mxu0 %v3455_v9  ;;  %v3459_v11 = vpop.eup %3458  ;;  %v2829_v9 = vld [vmem:[%s4194_s3 + $0x110] sm:$0xff] }
 0x52f   :  { %3204 = vmatprep.subr.mxu0 %v3457_v10 }
 0x530   :  { %3205 = vmatpush3.msra.mxu0 %v3457_v10  ;;  %v2830_v10 = vld [vmem:[%s4194_s3 + $0x118] sm:$0xff] }
 0x531   :  { %3206 = vmatprep.subr.mxu0 %v3459_v11 }
 0x532   :  { %3207 = vmatpush3.msra.mxu0 %v3459_v11  ;;  %v2839_v11 = vld [vmem:[%s4194_s3 + $0x120] sm:$0xff] }
 0x533   :  { %3209 = vmatmul.mubr.msk.f32.vlgmr.msra.gmra.mxu0 %vm189_vm2, %v2792_v12  ;;  %v1236_v12 = vpop.permute.xlu0 %1235 }
 0x534   :  { %3211 = vmatprep.mubr.msk.f32.mxu0 %vm189_vm2, %v2793_v13 }
 0x537   :  { %3212 = vmatmul.mubr.msk.f32.gmra.mxu0 %vm189_vm2, %v2794_v14  ;;  %v1231_v14 = vpop.permute.xlu1 %1230 }
 0x538   :  { %3236 = vmatprep.mubr.msk.f32.mxu0 %vm189_vm2, %v2815_v35 }
 0x5f3   :  { %v3210_v17 = vpop.f32.mrf.mxu0 }
 0x5f4   :  { %v929_v24 = vadd.f32 %v3210_v17, %v833_v22  ;;  %v1221_v22 = vpop.permute.xlu1 %1220 }
 0x5f5   :  { %v923_v19 = vpop.f32.mrf.mxu0 }
 0x5f6   :  { %v924_v27 = vadd.f32 %v923_v19, %v828_v26 }
 0x5f7   :  { %v3213_v20 = vpop.f32.mrf.mxu0 }
 0x5f8   :  { %v939_v21 = vadd.f32 %v3213_v20, %v843_v16 }
 0x5f9   :  { %v933_v23 = vpop.f32.mrf.mxu0 }
 0x5fa   :  { %3460 = vtanh.f32 %v939_v21  ;;  %v934_v25 = vadd.f32 %v933_v23, %v838_v18  ;;  %v1226_v18 = vpop.permute.xlu0 %1225 }
 0x5fc   :  { %3462 = vtanh.f32 %v934_v25 }
 0x5fd   :  { %3464 = vtanh.f32 %v929_v24 }
 0x5fe   :  { %3466 = vtanh.f32 %v924_v27 }
 0x607   :  { %v3461_v28 = vpop.eup %3460 }
 0x608   :  { %3214 = vmatprep.subr.mxu1 %v3461_v28 }
 0x609   :  { %v3463_v29 = vpop.eup %3462  ;;  %3215 = vmatpush3.msra.mxu1 %v3461_v28  ;;  %v2840_v28 = vld [vmem:[%s4194_s3 + $0x128] sm:$0xff] }
 0x60a   :  { %3216 = vmatprep.subr.mxu1 %v3463_v29  ;;  %v3465_v30 = vpop.eup %3464 }
 0x60b   :  { %3217 = vmatpush3.msra.mxu1 %v3463_v29  ;;  %v3467_v31 = vpop.eup %3466  ;;  %v2841_v29 = vld [vmem:[%s4194_s3 + $0x130] sm:$0xff] }
 0x60c   :  { %3218 = vmatprep.subr.mxu1 %v3465_v30 }
 0x60d   :  { %3219 = vmatpush3.msra.mxu1 %v3465_v30  ;;  %v2842_v30 = vld [vmem:[%s4194_s3 + $0x138] sm:$0xff] }
 0x60e   :  { %3220 = vmatprep.subr.mxu1 %v3467_v31 }
 0x60f   :  { %3221 = vmatpush3.msra.mxu1 %v3467_v31  ;;  %v2851_v31 = vld [vmem:[%s4194_s3 + $0x140] sm:$0xff] }
 0x610   :  { %3223 = vmatmul.mubr.msk.f32.vlgmr.msra.gmra.mxu1 %vm189_vm2, %v2804_v32  ;;  %v1367_v32 = vpop.permute.xlu0 %1366 }
 0x611   :  { %3225 = vmatprep.mubr.msk.f32.mxu1 %vm189_vm2, %v2805_v33 }
 0x614   :  { %3226 = vmatmul.mubr.msk.f32.gmra.mxu1 %vm189_vm2, %v2806_v34  ;;  %v1362_v34 = vpop.permute.xlu1 %1361 }
 0x615   :  { %3250 = vmatprep.mubr.msk.f32.mxu1 %vm189_vm2, %v2827_v55 }
 0x6d0   :  { %v3224_v37 = vpop.f32.mrf.mxu1 }
 0x6d1   :  { %v1060_v44 = vadd.f32 %v3224_v37, %v964_v42  ;;  %v1352_v42 = vpop.permute.xlu1 %1351 }
 0x6d2   :  { %v1054_v39 = vpop.f32.mrf.mxu1 }
 0x6d3   :  { %v1055_v47 = vadd.f32 %v1054_v39, %v959_v46 }
 0x6d4   :  { %v3227_v40 = vpop.f32.mrf.mxu1 }
 0x6d5   :  { %v1070_v41 = vadd.f32 %v3227_v40, %v974_v36 }
 0x6d6   :  { %v1064_v43 = vpop.f32.mrf.mxu1 }
 0x6d7   :  { %3468 = vtanh.f32 %v1070_v41  ;;  %v1065_v45 = vadd.f32 %v1064_v43, %v969_v38  ;;  %v1357_v38 = vpop.permute.xlu0 %1356 }
 0x6d9   :  { %3470 = vtanh.f32 %v1065_v45 }
 0x6da   :  { %3472 = vtanh.f32 %v1060_v44 }
 0x6db   :  { %3474 = vtanh.f32 %v1055_v47 }
 0x6e4   :  { %v3469_v48 = vpop.eup %3468 }
 0x6e5   :  { %3228 = vmatprep.subr.mxu0 %v3469_v48 }
 0x6e6   :  { %v3471_v49 = vpop.eup %3470  ;;  %3229 = vmatpush3.msra.mxu0 %v3469_v48  ;;  %v2852_v48 = vld [vmem:[%s4194_s3 + $0x148] sm:$0xff] }
 0x6e7   :  { %3230 = vmatprep.subr.mxu0 %v3471_v49  ;;  %v3473_v50 = vpop.eup %3472 }
 0x6e8   :  { %3231 = vmatpush3.msra.mxu0 %v3471_v49  ;;  %v3475_v51 = vpop.eup %3474  ;;  %v2853_v49 = vld [vmem:[%s4194_s3 + $0x150] sm:$0xff] }
 0x6e9   :  { %3232 = vmatprep.subr.mxu0 %v3473_v50 }
 0x6ea   :  { %3233 = vmatpush3.msra.mxu0 %v3473_v50  ;;  %v2854_v50 = vld [vmem:[%s4194_s3 + $0x158] sm:$0xff] }
 0x6eb   :  { %3234 = vmatprep.subr.mxu0 %v3475_v51 }
 0x6ec   :  { %3235 = vmatpush3.msra.mxu0 %v3475_v51  ;;  %v2863_v51 = vld [vmem:[%s4194_s3 + $0x160] sm:$0xff] }
 0x6ed   :  { %3237 = vmatmul.mubr.msk.f32.vlgmr.msra.gmra.mxu0 %vm189_vm2, %v2816_v52  ;;  %v1498_v52 = vpop.permute.xlu0 %1497 }
 0x6ee   :  { %3239 = vmatprep.mubr.msk.f32.mxu0 %vm189_vm2, %v2817_v53 }
 0x6f1   :  { %3240 = vmatmul.mubr.msk.f32.gmra.mxu0 %vm189_vm2, %v2818_v54  ;;  %v1493_v54 = vpop.permute.xlu1 %1492 }
 0x6f2   :  { %3264 = vmatprep.mubr.msk.f32.mxu0 %vm189_vm2, %v2839_v11 }
 0x7ad   :  { %v3238_v57 = vpop.f32.mrf.mxu0 }
 0x7ae   :  { %v1191_v0 = vadd.f32 %v3238_v57, %v1095_v62  ;;  %v1483_v62 = vpop.permute.xlu1 %1482 }
 0x7af   :  { %v1185_v59 = vpop.f32.mrf.mxu0 }
 0x7b0   :  { %v1186_v3 = vadd.f32 %v1185_v59, %v1090_v2 }
 0x7b1   :  { %v3241_v60 = vpop.f32.mrf.mxu0 }
 0x7b2   :  { %v1201_v61 = vadd.f32 %v3241_v60, %v1105_v56 }
 0x7b3   :  { %v1195_v63 = vpop.f32.mrf.mxu0 }
 0x7b4   :  { %3476 = vtanh.f32 %v1201_v61  ;;  %v1196_v1 = vadd.f32 %v1195_v63, %v1100_v58  ;;  %v1488_v58 = vpop.permute.xlu0 %1487 }
 0x7b6   :  { %3478 = vtanh.f32 %v1196_v1 }
 0x7b7   :  { %3480 = vtanh.f32 %v1191_v0 }
 0x7b8   :  { %3482 = vtanh.f32 %v1186_v3 }
 0x7c1   :  { %v3477_v4 = vpop.eup %3476 }
 0x7c2   :  { %3242 = vmatprep.subr.mxu1 %v3477_v4 }
 0x7c3   :  { %v3479_v5 = vpop.eup %3478  ;;  %3243 = vmatpush3.msra.mxu1 %v3477_v4  ;;  %v2864_v4 = vld [vmem:[%s4194_s3 + $0x168] sm:$0xff] }
 0x7c4   :  { %3244 = vmatprep.subr.mxu1 %v3479_v5  ;;  %v3481_v6 = vpop.eup %3480 }
 0x7c5   :  { %3245 = vmatpush3.msra.mxu1 %v3479_v5  ;;  %v3483_v7 = vpop.eup %3482  ;;  %v2865_v5 = vld [vmem:[%s4194_s3 + $0x170] sm:$0xff] }
 0x7c6   :  { %3246 = vmatprep.subr.mxu1 %v3481_v6 }
 0x7c7   :  { %3247 = vmatpush3.msra.mxu1 %v3481_v6  ;;  %v2866_v6 = vld [vmem:[%s4194_s3 + $0x178] sm:$0xff] }
 0x7c8   :  { %3248 = vmatprep.subr.mxu1 %v3483_v7 }
 0x7c9   :  { %3249 = vmatpush3.msra.mxu1 %v3483_v7  ;;  %v2875_v7 = vld [vmem:[%s4194_s3 + $0x180] sm:$0xff] }
 0x7ca   :  { %3251 = vmatmul.mubr.msk.f32.vlgmr.msra.gmra.mxu1 %vm189_vm2, %v2828_v8  ;;  %v1629_v8 = vpop.permute.xlu0 %1628 }
 0x7cb   :  { %3253 = vmatprep.mubr.msk.f32.mxu1 %vm189_vm2, %v2829_v9 }
 0x7ce   :  { %3254 = vmatmul.mubr.msk.f32.gmra.mxu1 %vm189_vm2, %v2830_v10  ;;  %v1624_v10 = vpop.permute.xlu1 %1623 }
 0x7cf   :  { %3278 = vmatprep.mubr.msk.f32.mxu1 %vm189_vm2, %v2851_v31 }
 0x88a   :  { %v3252_v13 = vpop.f32.mrf.mxu1 }
 0x88b   :  { %v1322_v20 = vadd.f32 %v3252_v13, %v1226_v18  ;;  %v1614_v18 = vpop.permute.xlu1 %1613 }
 0x88c   :  { %v1316_v15 = vpop.f32.mrf.mxu1 }
 0x88d   :  { %v1317_v23 = vadd.f32 %v1316_v15, %v1221_v22 }
 0x88e   :  { %v3255_v16 = vpop.f32.mrf.mxu1 }
 0x88f   :  { %v1332_v17 = vadd.f32 %v3255_v16, %v1236_v12 }
 0x890   :  { %v1326_v19 = vpop.f32.mrf.mxu1 }
 0x891   :  { %3484 = vtanh.f32 %v1332_v17  ;;  %v1327_v21 = vadd.f32 %v1326_v19, %v1231_v14  ;;  %v1619_v14 = vpop.permute.xlu0 %1618 }
 0x893   :  { %3486 = vtanh.f32 %v1327_v21 }
 0x894   :  { %3488 = vtanh.f32 %v1322_v20 }
 0x895   :  { %3490 = vtanh.f32 %v1317_v23 }
 0x89e   :  { %v3485_v24 = vpop.eup %3484 }
 0x89f   :  { %3256 = vmatprep.subr.mxu0 %v3485_v24 }
 0x8a0   :  { %v3487_v25 = vpop.eup %3486  ;;  %3257 = vmatpush3.msra.mxu0 %v3485_v24  ;;  %v2876_v24 = vld [vmem:[%s4194_s3 + $0x188] sm:$0xff] }
 0x8a1   :  { %3258 = vmatprep.subr.mxu0 %v3487_v25  ;;  %v3489_v26 = vpop.eup %3488 }
 0x8a2   :  { %3259 = vmatpush3.msra.mxu0 %v3487_v25  ;;  %v3491_v27 = vpop.eup %3490  ;;  %v2877_v25 = vld [vmem:[%s4194_s3 + $0x190] sm:$0xff] }
 0x8a3   :  { %3260 = vmatprep.subr.mxu0 %v3489_v26 }
 0x8a4   :  { %3261 = vmatpush3.msra.mxu0 %v3489_v26  ;;  %v2878_v26 = vld [vmem:[%s4194_s3 + $0x198] sm:$0xff] }
 0x8a5   :  { %3262 = vmatprep.subr.mxu0 %v3491_v27 }
 0x8a6   :  { %3263 = vmatpush3.msra.mxu0 %v3491_v27  ;;  %v2887_v27 = vld [vmem:[%s4194_s3 + $0x1a0] sm:$0xff] }
 0x8a7   :  { %3265 = vmatmul.mubr.msk.f32.vlgmr.msra.gmra.mxu0 %vm189_vm2, %v2840_v28  ;;  %v1760_v28 = vpop.permute.xlu0 %1759 }
 0x8a8   :  { %3267 = vmatprep.mubr.msk.f32.mxu0 %vm189_vm2, %v2841_v29 }
 0x8ab   :  { %3268 = vmatmul.mubr.msk.f32.gmra.mxu0 %vm189_vm2, %v2842_v30  ;;  %v1755_v30 = vpop.permute.xlu1 %1754 }
 0x8ac   :  { %3292 = vmatprep.mubr.msk.f32.mxu0 %vm189_vm2, %v2863_v51 }
 0x967   :  { %v3266_v33 = vpop.f32.mrf.mxu0 }
 0x968   :  { %v1453_v40 = vadd.f32 %v3266_v33, %v1357_v38  ;;  %v1745_v38 = vpop.permute.xlu1 %1744 }
 0x969   :  { %v1447_v35 = vpop.f32.mrf.mxu0 }
 0x96a   :  { %v1448_v43 = vadd.f32 %v1447_v35, %v1352_v42 }
 0x96b   :  { %v3269_v36 = vpop.f32.mrf.mxu0 }
 0x96c   :  { %v1463_v37 = vadd.f32 %v3269_v36, %v1367_v32 }
 0x96d   :  { %v1457_v39 = vpop.f32.mrf.mxu0 }
 0x96e   :  { %3492 = vtanh.f32 %v1463_v37  ;;  %v1458_v41 = vadd.f32 %v1457_v39, %v1362_v34  ;;  %v1750_v34 = vpop.permute.xlu0 %1749 }
 0x970   :  { %3494 = vtanh.f32 %v1458_v41 }
 0x971   :  { %3496 = vtanh.f32 %v1453_v40 }
 0x972   :  { %3498 = vtanh.f32 %v1448_v43 }
 0x97b   :  { %v3493_v44 = vpop.eup %3492 }
 0x97c   :  { %3270 = vmatprep.subr.mxu1 %v3493_v44 }
 0x97d   :  { %v3495_v45 = vpop.eup %3494  ;;  %3271 = vmatpush3.msra.mxu1 %v3493_v44  ;;  %v2888_v44 = vld [vmem:[%s4194_s3 + $0x1a8] sm:$0xff] }
 0x97e   :  { %3272 = vmatprep.subr.mxu1 %v3495_v45  ;;  %v3497_v46 = vpop.eup %3496 }
 0x97f   :  { %3273 = vmatpush3.msra.mxu1 %v3495_v45  ;;  %v3499_v47 = vpop.eup %3498  ;;  %v2889_v45 = vld [vmem:[%s4194_s3 + $0x1b0] sm:$0xff] }
 0x980   :  { %3274 = vmatprep.subr.mxu1 %v3497_v46 }
 0x981   :  { %3275 = vmatpush3.msra.mxu1 %v3497_v46  ;;  %v2890_v46 = vld [vmem:[%s4194_s3 + $0x1b8] sm:$0xff] }
 0x982   :  { %3276 = vmatprep.subr.mxu1 %v3499_v47 }
 0x983   :  { %3277 = vmatpush3.msra.mxu1 %v3499_v47  ;;  %v2899_v47 = vld [vmem:[%s4194_s3 + $0x1c0] sm:$0xff] }
 0x984   :  { %3279 = vmatmul.mubr.msk.f32.vlgmr.msra.gmra.mxu1 %vm189_vm2, %v2852_v48  ;;  %v1891_v48 = vpop.permute.xlu0 %1890 }
 0x985   :  { %3281 = vmatprep.mubr.msk.f32.mxu1 %vm189_vm2, %v2853_v49 }
 0x988   :  { %3282 = vmatmul.mubr.msk.f32.gmra.mxu1 %vm189_vm2, %v2854_v50  ;;  %v1886_v50 = vpop.permute.xlu1 %1885 }
 0x989   :  { %3306 = vmatprep.mubr.msk.f32.mxu1 %vm189_vm2, %v2875_v7 }
 0xa44   :  { %v3280_v53 = vpop.f32.mrf.mxu1 }
 0xa45   :  { %v1584_v60 = vadd.f32 %v3280_v53, %v1488_v58  ;;  %v1876_v58 = vpop.permute.xlu1 %1875 }
 0xa46   :  { %v1578_v55 = vpop.f32.mrf.mxu1 }
 0xa47   :  { %v1579_v63 = vadd.f32 %v1578_v55, %v1483_v62 }
 0xa48   :  { %v3283_v56 = vpop.f32.mrf.mxu1 }
 0xa49   :  { %v1594_v57 = vadd.f32 %v3283_v56, %v1498_v52 }
 0xa4a   :  { %v1588_v59 = vpop.f32.mrf.mxu1 }
 0xa4b   :  { %3500 = vtanh.f32 %v1594_v57  ;;  %v1589_v61 = vadd.f32 %v1588_v59, %v1493_v54  ;;  %v1881_v54 = vpop.permute.xlu0 %1880 }
 0xa4d   :  { %3502 = vtanh.f32 %v1589_v61 }
 0xa4e   :  { %3504 = vtanh.f32 %v1584_v60 }
 0xa4f   :  { %3506 = vtanh.f32 %v1579_v63 }
 0xa58   :  { %v3501_v0 = vpop.eup %3500 }
 0xa59   :  { %3284 = vmatprep.subr.mxu0 %v3501_v0 }
 0xa5a   :  { %v3503_v1 = vpop.eup %3502  ;;  %3285 = vmatpush3.msra.mxu0 %v3501_v0  ;;  %v2900_v0 = vld [vmem:[%s4194_s3 + $0x1c8] sm:$0xff] }
 0xa5b   :  { %3286 = vmatprep.subr.mxu0 %v3503_v1  ;;  %v3505_v2 = vpop.eup %3504 }
 0xa5c   :  { %3287 = vmatpush3.msra.mxu0 %v3503_v1  ;;  %v3507_v3 = vpop.eup %3506  ;;  %v2901_v1 = vld [vmem:[%s4194_s3 + $0x1d0] sm:$0xff] }
 0xa5d   :  { %3288 = vmatprep.subr.mxu0 %v3505_v2 }
 0xa5e   :  { %3289 = vmatpush3.msra.mxu0 %v3505_v2  ;;  %v2902_v2 = vld [vmem:[%s4194_s3 + $0x1d8] sm:$0xff] }
 0xa5f   :  { %3290 = vmatprep.subr.mxu0 %v3507_v3 }
 0xa60   :  { %3291 = vmatpush3.msra.mxu0 %v3507_v3  ;;  %v2911_v3 = vld [vmem:[%s4194_s3 + $0x1e0] sm:$0xff] }
 0xa61   :  { %3293 = vmatmul.mubr.msk.f32.vlgmr.msra.gmra.mxu0 %vm189_vm2, %v2864_v4  ;;  %v2022_v4 = vpop.permute.xlu0 %2021 }
 0xa62   :  { %3295 = vmatprep.mubr.msk.f32.mxu0 %vm189_vm2, %v2865_v5 }
 0xa65   :  { %3296 = vmatmul.mubr.msk.f32.gmra.mxu0 %vm189_vm2, %v2866_v6  ;;  %v2017_v6 = vpop.permute.xlu1 %2016 }
 0xa66   :  { %3320 = vmatprep.mubr.msk.f32.mxu0 %vm189_vm2, %v2887_v27 }
 0xb21   :  { %v3294_v9 = vpop.f32.mrf.mxu0 }
 0xb22   :  { %v1715_v16 = vadd.f32 %v3294_v9, %v1619_v14  ;;  %v2007_v14 = vpop.permute.xlu1 %2006 }
 0xb23   :  { %v1709_v11 = vpop.f32.mrf.mxu0 }
 0xb24   :  { %v1710_v19 = vadd.f32 %v1709_v11, %v1614_v18 }
 0xb25   :  { %v3297_v12 = vpop.f32.mrf.mxu0 }
 0xb26   :  { %v1725_v13 = vadd.f32 %v3297_v12, %v1629_v8 }
 0xb27   :  { %v1719_v15 = vpop.f32.mrf.mxu0 }
 0xb28   :  { %3508 = vtanh.f32 %v1725_v13  ;;  %v1720_v17 = vadd.f32 %v1719_v15, %v1624_v10  ;;  %v2012_v10 = vpop.permute.xlu0 %2011 }
 0xb2a   :  { %3510 = vtanh.f32 %v1720_v17 }
 0xb2b   :  { %3512 = vtanh.f32 %v1715_v16 }
 0xb2c   :  { %3514 = vtanh.f32 %v1710_v19 }
 0xb35   :  { %v3509_v20 = vpop.eup %3508 }
 0xb36   :  { %3298 = vmatprep.subr.mxu1 %v3509_v20 }
 0xb37   :  { %v3511_v21 = vpop.eup %3510  ;;  %3299 = vmatpush3.msra.mxu1 %v3509_v20  ;;  %v2912_v20 = vld [vmem:[%s4194_s3 + $0x1e8] sm:$0xff] }
 0xb38   :  { %3300 = vmatprep.subr.mxu1 %v3511_v21  ;;  %v3513_v22 = vpop.eup %3512 }
 0xb39   :  { %3301 = vmatpush3.msra.mxu1 %v3511_v21  ;;  %v3515_v23 = vpop.eup %3514  ;;  %v2913_v21 = vld [vmem:[%s4194_s3 + $0x1f0] sm:$0xff] }
 0xb3a   :  { %3302 = vmatprep.subr.mxu1 %v3513_v22 }
 0xb3b   :  { %3303 = vmatpush3.msra.mxu1 %v3513_v22  ;;  %v2914_v22 = vld [vmem:[%s4194_s3 + $0x1f8] sm:$0xff] }
 0xb3c   :  { %3304 = vmatprep.subr.mxu1 %v3515_v23 }
 0xb3d   :  { %3305 = vmatpush3.msra.mxu1 %v3515_v23  ;;  %v2923_v23 = vld [vmem:[%s4194_s3 + $0x200] sm:$0xff] }
 0xb3e   :  { %3307 = vmatmul.mubr.msk.f32.vlgmr.msra.gmra.mxu1 %vm189_vm2, %v2876_v24  ;;  %v2153_v24 = vpop.permute.xlu0 %2152 }
 0xb3f   :  { %3309 = vmatprep.mubr.msk.f32.mxu1 %vm189_vm2, %v2877_v25 }
 0xb42   :  { %3310 = vmatmul.mubr.msk.f32.gmra.mxu1 %vm189_vm2, %v2878_v26  ;;  %v2148_v26 = vpop.permute.xlu1 %2147 }
 0xb43   :  { %3334 = vmatprep.mubr.msk.f32.mxu1 %vm189_vm2, %v2899_v47 }
 0xbfe   :  { %v3308_v29 = vpop.f32.mrf.mxu1 }
 0xbff   :  { %v1846_v36 = vadd.f32 %v3308_v29, %v1750_v34  ;;  %v2138_v34 = vpop.permute.xlu1 %2137 }
 0xc00   :  { %v1840_v31 = vpop.f32.mrf.mxu1 }
 0xc01   :  { %v1841_v39 = vadd.f32 %v1840_v31, %v1745_v38 }
 0xc02   :  { %v3311_v32 = vpop.f32.mrf.mxu1 }
 0xc03   :  { %v1856_v33 = vadd.f32 %v3311_v32, %v1760_v28 }
 0xc04   :  { %v1850_v35 = vpop.f32.mrf.mxu1 }
 0xc05   :  { %3516 = vtanh.f32 %v1856_v33  ;;  %v1851_v37 = vadd.f32 %v1850_v35, %v1755_v30  ;;  %v2143_v30 = vpop.permute.xlu0 %2142 }
 0xc07   :  { %3518 = vtanh.f32 %v1851_v37 }
 0xc08   :  { %3520 = vtanh.f32 %v1846_v36 }
 0xc09   :  { %3522 = vtanh.f32 %v1841_v39 }
 0xc12   :  { %v3517_v40 = vpop.eup %3516 }
 0xc13   :  { %3312 = vmatprep.subr.mxu0 %v3517_v40 }
 0xc14   :  { %v3519_v41 = vpop.eup %3518  ;;  %3313 = vmatpush3.msra.mxu0 %v3517_v40  ;;  %v2924_v40 = vld [vmem:[%s4194_s3 + $0x208] sm:$0xff] }
 0xc15   :  { %3314 = vmatprep.subr.mxu0 %v3519_v41  ;;  %v3521_v42 = vpop.eup %3520 }
 0xc16   :  { %3315 = vmatpush3.msra.mxu0 %v3519_v41  ;;  %v3523_v43 = vpop.eup %3522  ;;  %v2925_v41 = vld [vmem:[%s4194_s3 + $0x210] sm:$0xff] }
 0xc17   :  { %3316 = vmatprep.subr.mxu0 %v3521_v42 }
 0xc18   :  { %3317 = vmatpush3.msra.mxu0 %v3521_v42  ;;  %v2926_v42 = vld [vmem:[%s4194_s3 + $0x218] sm:$0xff] }
 0xc19   :  { %3318 = vmatprep.subr.mxu0 %v3523_v43 }
 0xc1a   :  { %3319 = vmatpush3.msra.mxu0 %v3523_v43  ;;  %v2935_v43 = vld [vmem:[%s4194_s3 + $0x220] sm:$0xff] }
 0xc1b   :  { %3321 = vmatmul.mubr.msk.f32.vlgmr.msra.gmra.mxu0 %vm189_vm2, %v2888_v44  ;;  %v2284_v44 = vpop.permute.xlu0 %2283 }
 0xc1c   :  { %3323 = vmatprep.mubr.msk.f32.mxu0 %vm189_vm2, %v2889_v45 }
 0xc1f   :  { %3324 = vmatmul.mubr.msk.f32.gmra.mxu0 %vm189_vm2, %v2890_v46  ;;  %v2279_v46 = vpop.permute.xlu1 %2278 }
 0xc20   :  { %3348 = vmatprep.mubr.msk.f32.mxu0 %vm189_vm2, %v2911_v3 }
 0xcdb   :  { %v3322_v49 = vpop.f32.mrf.mxu0 }
 0xcdc   :  { %v1977_v56 = vadd.f32 %v3322_v49, %v1881_v54  ;;  %v2269_v54 = vpop.permute.xlu1 %2268 }
 0xcdd   :  { %v1971_v51 = vpop.f32.mrf.mxu0 }
 0xcde   :  { %v1972_v59 = vadd.f32 %v1971_v51, %v1876_v58 }
 0xcdf   :  { %v3325_v52 = vpop.f32.mrf.mxu0 }
 0xce0   :  { %v1987_v53 = vadd.f32 %v3325_v52, %v1891_v48 }
 0xce1   :  { %v1981_v55 = vpop.f32.mrf.mxu0 }
 0xce2   :  { %3524 = vtanh.f32 %v1987_v53  ;;  %v1982_v57 = vadd.f32 %v1981_v55, %v1886_v50  ;;  %v2274_v50 = vpop.permute.xlu0 %2273 }
 0xce4   :  { %3526 = vtanh.f32 %v1982_v57 }
 0xce5   :  { %3528 = vtanh.f32 %v1977_v56 }
 0xce6   :  { %3530 = vtanh.f32 %v1972_v59 }
 0xcef   :  { %v3525_v60 = vpop.eup %3524 }
 0xcf0   :  { %3326 = vmatprep.subr.mxu1 %v3525_v60 }
 0xcf1   :  { %v3527_v61 = vpop.eup %3526  ;;  %3327 = vmatpush3.msra.mxu1 %v3525_v60  ;;  %v2936_v60 = vld [vmem:[%s4194_s3 + $0x228] sm:$0xff] }
 0xcf2   :  { %3328 = vmatprep.subr.mxu1 %v3527_v61  ;;  %v3529_v62 = vpop.eup %3528 }
 0xcf3   :  { %3329 = vmatpush3.msra.mxu1 %v3527_v61  ;;  %v3531_v63 = vpop.eup %3530  ;;  %v2937_v61 = vld [vmem:[%s4194_s3 + $0x230] sm:$0xff] }
 0xcf4   :  { %3330 = vmatprep.subr.mxu1 %v3529_v62 }
 0xcf5   :  { %3331 = vmatpush3.msra.mxu1 %v3529_v62  ;;  %v2938_v62 = vld [vmem:[%s4194_s3 + $0x238] sm:$0xff] }
 0xcf6   :  { %3332 = vmatprep.subr.mxu1 %v3531_v63 }
 0xcf7   :  { %3333 = vmatpush3.msra.mxu1 %v3531_v63  ;;  %v2947_v63 = vld [vmem:[%s4194_s3 + $0x240] sm:$0xff] }
 0xcf8   :  { %3335 = vmatmul.mubr.msk.f32.vlgmr.msra.gmra.mxu1 %vm189_vm2, %v2900_v0  ;;  %v2415_v0 = vpop.permute.xlu0 %2414 }
 0xcf9   :  { %3337 = vmatprep.mubr.msk.f32.mxu1 %vm189_vm2, %v2901_v1 }
 0xcfc   :  { %3338 = vmatmul.mubr.msk.f32.gmra.mxu1 %vm189_vm2, %v2902_v2  ;;  %v2410_v2 = vpop.permute.xlu1 %2409 }
 0xcfd   :  { %3362 = vmatprep.mubr.msk.f32.mxu1 %vm189_vm2, %v2923_v23 }
 0xdb8   :  { %v3336_v5 = vpop.f32.mrf.mxu1 }
 0xdb9   :  { %v2108_v12 = vadd.f32 %v3336_v5, %v2012_v10  ;;  %v2400_v10 = vpop.permute.xlu1 %2399 }
 0xdba   :  { %v2102_v7 = vpop.f32.mrf.mxu1 }
 0xdbb   :  { %v2103_v15 = vadd.f32 %v2102_v7, %v2007_v14 }
 0xdbc   :  { %v3339_v8 = vpop.f32.mrf.mxu1 }
 0xdbd   :  { %v2118_v9 = vadd.f32 %v3339_v8, %v2022_v4 }
 0xdbe   :  { %v2112_v11 = vpop.f32.mrf.mxu1 }
 0xdbf   :  { %3532 = vtanh.f32 %v2118_v9  ;;  %v2113_v13 = vadd.f32 %v2112_v11, %v2017_v6  ;;  %v2405_v6 = vpop.permute.xlu0 %2404 }
 0xdc1   :  { %3534 = vtanh.f32 %v2113_v13 }
 0xdc2   :  { %3536 = vtanh.f32 %v2108_v12 }
 0xdc3   :  { %3538 = vtanh.f32 %v2103_v15 }
 0xdcc   :  { %v3533_v16 = vpop.eup %3532 }
 0xdcd   :  { %3340 = vmatprep.subr.mxu0 %v3533_v16 }
 0xdce   :  { %v3535_v17 = vpop.eup %3534  ;;  %3341 = vmatpush3.msra.mxu0 %v3533_v16  ;;  %v2948_v16 = vld [vmem:[%s4194_s3 + $0x248] sm:$0xff] }
 0xdcf   :  { %3342 = vmatprep.subr.mxu0 %v3535_v17  ;;  %v3537_v18 = vpop.eup %3536 }
 0xdd0   :  { %3343 = vmatpush3.msra.mxu0 %v3535_v17  ;;  %v3539_v19 = vpop.eup %3538  ;;  %v2949_v17 = vld [vmem:[%s4194_s3 + $0x250] sm:$0xff] }
 0xdd1   :  { %3344 = vmatprep.subr.mxu0 %v3537_v18 }
 0xdd2   :  { %3345 = vmatpush3.msra.mxu0 %v3537_v18  ;;  %v2950_v18 = vld [vmem:[%s4194_s3 + $0x258] sm:$0xff] }
 0xdd3   :  { %3346 = vmatprep.subr.mxu0 %v3539_v19 }
 0xdd4   :  { %3347 = vmatpush3.msra.mxu0 %v3539_v19  ;;  %v3573_v19 = vmov 0.0  }
 0xdd5   :  { %3349 = vmatmul.mubr.msk.f32.vlgmr.msra.gmra.mxu0 %vm189_vm2, %v2912_v20  ;;  %v2546_v20 = vpop.permute.xlu0 %2545 }
 0xdd6   :  { %3351 = vmatprep.mubr.msk.f32.mxu0 %vm189_vm2, %v2913_v21 }
 0xdd9   :  { %3352 = vmatmul.mubr.msk.f32.gmra.mxu0 %vm189_vm2, %v2914_v22  ;;  %v2541_v22 = vpop.permute.xlu1 %2540 }
 0xdda   :  { %3376 = vmatprep.mubr.msk.f32.mxu0 %vm189_vm2, %v2935_v43 }
 0xe95   :  { %v3350_v25 = vpop.f32.mrf.mxu0 }
 0xe96   :  { %v2239_v32 = vadd.f32 %v3350_v25, %v2143_v30  ;;  %v2531_v30 = vpop.permute.xlu1 %2530 }
 0xe97   :  { %v2233_v27 = vpop.f32.mrf.mxu0 }
 0xe98   :  { %v2234_v35 = vadd.f32 %v2233_v27, %v2138_v34 }
 0xe99   :  { %v3353_v28 = vpop.f32.mrf.mxu0 }
 0xe9a   :  { %v2249_v29 = vadd.f32 %v3353_v28, %v2153_v24 }
 0xe9b   :  { %v2243_v31 = vpop.f32.mrf.mxu0 }
 0xe9c   :  { %3540 = vtanh.f32 %v2249_v29  ;;  %v2244_v33 = vadd.f32 %v2243_v31, %v2148_v26  ;;  %v2536_v26 = vpop.permute.xlu0 %2535 }
 0xe9e   :  { %3542 = vtanh.f32 %v2244_v33 }
 0xe9f   :  { %3544 = vtanh.f32 %v2239_v32 }
 0xea0   :  { %3546 = vtanh.f32 %v2234_v35  ;;  %v2649_v35 = vld [vmem:[%s4196_s5] sm:$0x7] }
 0xea9   :  { %v3541_v36 = vpop.eup %3540 }
 0xeaa   :  { %3354 = vmatprep.subr.mxu1 %v3541_v36 }
 0xeab   :  { %v3543_v37 = vpop.eup %3542  ;;  %3355 = vmatpush3.msra.mxu1 %v3541_v36 }
 0xeac   :  { %3356 = vmatprep.subr.mxu1 %v3543_v37  ;;  %v3545_v38 = vpop.eup %3544 }
 0xead   :  { %3357 = vmatpush3.msra.mxu1 %v3543_v37  ;;  %v3547_v39 = vpop.eup %3546  ;;  %v2654_v37 = vpop.permute.xlu0 %2653 }
 0xeae   :  { %3358 = vmatprep.subr.mxu1 %v3545_v38 }
 0xeaf   :  { %3359 = vmatpush3.msra.mxu1 %v3545_v38 }
 0xeb0   :  { %3360 = vmatprep.subr.mxu1 %v3547_v39 }
 0xeb1   :  { %3361 = vmatpush3.msra.mxu1 %v3547_v39 }
 0xeb2   :  { %3363 = vmatmul.mubr.msk.f32.vlgmr.msra.gmra.mxu1 %vm189_vm2, %v2924_v40 }
 0xeb3   :  { %3365 = vmatprep.mubr.msk.f32.mxu1 %vm189_vm2, %v2925_v41 }
 0xeb6   :  { %3366 = vmatmul.mubr.msk.f32.gmra.mxu1 %vm189_vm2, %v2926_v42 }
 0xeb7   :  { %3390 = vmatprep.mubr.msk.f32.mxu1 %vm189_vm2, %v2947_v63 }
 0xf72   :  { %v3364_v45 = vpop.f32.mrf.mxu1 }
 0xf73   :  { %v2370_v52 = vadd.f32 %v3364_v45, %v2274_v50 }
 0xf74   :  { %v2364_v47 = vpop.f32.mrf.mxu1 }
 0xf75   :  { %v2365_v55 = vadd.f32 %v2364_v47, %v2269_v54 }
 0xf76   :  { %v3367_v48 = vpop.f32.mrf.mxu1 }
 0xf77   :  { %v2380_v49 = vadd.f32 %v3367_v48, %v2284_v44 }
 0xf78   :  { %v2374_v51 = vpop.f32.mrf.mxu1 }
 0xf79   :  { %3548 = vtanh.f32 %v2380_v49  ;;  %v2375_v53 = vadd.f32 %v2374_v51, %v2279_v46 }
 0xf7b   :  { %3550 = vtanh.f32 %v2375_v53 }
 0xf7c   :  { %3552 = vtanh.f32 %v2370_v52 }
 0xf7d   :  { %3554 = vtanh.f32 %v2365_v55 }
 0xf86   :  { %v3549_v56 = vpop.eup %3548 }
 0xf87   :  { %3368 = vmatprep.subr.mxu0 %v3549_v56 }
 0xf88   :  { %v3551_v57 = vpop.eup %3550  ;;  %3369 = vmatpush3.msra.mxu0 %v3549_v56 }
 0xf89   :  { %3370 = vmatprep.subr.mxu0 %v3551_v57  ;;  %v3553_v58 = vpop.eup %3552 }
 0xf8a   :  { %3371 = vmatpush3.msra.mxu0 %v3551_v57  ;;  %v3555_v59 = vpop.eup %3554 }
 0xf8b   :  { %3372 = vmatprep.subr.mxu0 %v3553_v58 }
 0xf8c   :  { %3373 = vmatpush3.msra.mxu0 %v3553_v58 }
 0xf8d   :  { %3374 = vmatprep.subr.mxu0 %v3555_v59 }
 0xf8e   :  { %3375 = vmatpush3.msra.mxu0 %v3555_v59 }
 0xf8f   :  { %3377 = vmatmul.mubr.msk.f32.vlgmr.msra.gmra.mxu0 %vm189_vm2, %v2936_v60  ;;  %3396 = vmatprep.subr.mxu0 %v3573_v19 }
 0xf90   :  { %3379 = vmatprep.mubr.msk.f32.mxu0 %vm189_vm2, %v2937_v61 }
 0xf93   :  { %3380 = vmatmul.mubr.msk.f32.gmra.mxu0 %vm189_vm2, %v2938_v62 }
 0xf94   :  { %3404 = vmatprep.mubr.msk.f32.mxu0 %vm3574_vm3, %v3573_v19 }
0x104f   :  { %v3378_v1 = vpop.f32.mrf.mxu0 }
0x1050   :  { %v2501_v8 = vadd.f32 %v3378_v1, %v2405_v6 }
0x1051   :  { %v2495_v3 = vpop.f32.mrf.mxu0 }
0x1052   :  { %v2496_v11 = vadd.f32 %v2495_v3, %v2400_v10 }
0x1053   :  { %v3381_v4 = vpop.f32.mrf.mxu0 }
0x1054   :  { %v2511_v5 = vadd.f32 %v3381_v4, %v2415_v0 }
0x1055   :  { %v2505_v7 = vpop.f32.mrf.mxu0 }
0x1056   :  { %3556 = vtanh.f32 %v2511_v5  ;;  %v2506_v9 = vadd.f32 %v2505_v7, %v2410_v2 }
0x1058   :  { %3558 = vtanh.f32 %v2506_v9 }
0x1059   :  { %3560 = vtanh.f32 %v2501_v8 }
0x105a   :  { %3562 = vtanh.f32 %v2496_v11 }
0x1063   :  { %v3557_v12 = vpop.eup %3556 }
0x1064   :  { %3382 = vmatprep.subr.mxu1 %v3557_v12 }
0x1065   :  { %v3559_v13 = vpop.eup %3558  ;;  %3383 = vmatpush3.msra.mxu1 %v3557_v12 }
0x1066   :  { %3384 = vmatprep.subr.mxu1 %v3559_v13  ;;  %v3561_v14 = vpop.eup %3560 }
0x1067   :  { %3385 = vmatpush3.msra.mxu1 %v3559_v13  ;;  %v3563_v15 = vpop.eup %3562 }
0x1068   :  { %3386 = vmatprep.subr.mxu1 %v3561_v14 }
0x1069   :  { %3387 = vmatpush3.msra.mxu1 %v3561_v14 }
0x106a   :  { %3388 = vmatprep.subr.mxu1 %v3563_v15 }
0x106b   :  { %3389 = vmatpush3.msra.mxu1 %v3563_v15 }
0x106c   :  { %3391 = vmatmul.mubr.msk.f32.vlgmr.msra.gmra.mxu1 %vm189_vm2, %v2948_v16 }
0x106d   :  { %3393 = vmatprep.mubr.msk.f32.mxu1 %vm189_vm2, %v2949_v17 }
0x1070   :  { %3394 = vmatmul.mubr.msk.f32.gmra.mxu1 %vm189_vm2, %v2950_v18 }
0x112c   :  { %v3392_v21 = vpop.f32.mrf.mxu1 }
0x112d   :  { %v2632_v28 = vadd.f32 %v3392_v21, %v2536_v26 }
0x112e   :  { %v2626_v23 = vpop.f32.mrf.mxu1 }
0x112f   :  { %v2627_v31 = vadd.f32 %v2626_v23, %v2531_v30 }
0x1130   :  { %v3395_v24 = vpop.f32.mrf.mxu1 }
0x1131   :  { %v2642_v25 = vadd.f32 %v3395_v24, %v2546_v20 }
0x1132   :  { %v2636_v27 = vpop.f32.mrf.mxu1 }
0x1133   :  { %3564 = vtanh.f32 %v2642_v25  ;;  %v2637_v29 = vadd.f32 %v2636_v27, %v2541_v22 }
0x1135   :  { %3566 = vtanh.f32 %v2637_v29 }
0x1136   :  { %3568 = vtanh.f32 %v2632_v28 }
0x1137   :  { %3570 = vtanh.f32 %v2627_v31 }
0x1140   :  { %v3565_v32 = vpop.eup %3564 }
0x1141   :  { %3397 = vmatpush3.msra.mxu0 %v3565_v32 }
0x1142   :  { %v3567_v33 = vpop.eup %3566  ;;  %3398 = vmatprep.subr.mxu0 %v3573_v19 }
0x1143   :  { %3399 = vmatpush3.msra.mxu0 %v3567_v33  ;;  %v3569_v34 = vpop.eup %3568 }
0x1144   :  { %3400 = vmatprep.subr.mxu0 %v3573_v19  ;;  %v3571_v36 = vpop.eup %3570 }
0x1145   :  { %3401 = vmatpush3.msra.mxu0 %v3569_v34 }
0x1146   :  { %3402 = vmatprep.subr.mxu0 %v3573_v19 }
0x1147   :  { %3403 = vmatpush3.msra.mxu0 %v3571_v36 }
0x1148   :  { %3405 = vmatmul.mubr.msk.f32.vlgmr.msra.gmra.mxu0 %vm189_vm2, %v2649_v35 }
0x1208   :  { %v2725_v38 = vpop.f32.mrf.mxu0 }
0x1209   :  { %v2726_v39 = vadd.f32 %v2725_v38, %v2654_v37 }
0x120a   :  { %v3406_v40 = vpop.f32.mrf.mxu0 }
0x120b   :  { %2729 = vst [vmem:[%s4197_s7] sm:$0x7] %v2726_v39 }

</bundles_post_ra>
